<compile_context>
chip_gen: v7x
topology: tpu7x:2x2x1
jax: 0.10.0
libtpu: 0.0.40
codegen_flags: <defaults>
</compile_context>

<pallas_src>
import numpy as np
import jax
import jax.numpy as jnp
from jax import lax
from jax.experimental import pallas as pl
from jax.experimental.pallas import tpu as pltpu


# --------------------------------- kernel -----------------------------------

def discriminator_kernel(gi1_ref, h0_ref, h1_ref,
                         wh1_ref, bhn1_ref,
                         wi2_ref, bi2_ref, wh2_ref, bhn2_ref,
                         wout_ref, bout_ref,
                         out_ref):
    T = gi1_ref.shape[0]
    H = h0_ref.shape[1]

    # Hoist all weight / bias loads out of the recurrence (one VMEM read each).
    wh1 = wh1_ref[...]      # (H, 3H)   [W_hr1 | W_hz1 | W_hn1]
    bhn1 = bhn1_ref[...]    # (1, H)    b_hn1
    wi2 = wi2_ref[...]      # (H, 3H)   [W_ir2 | W_iz2 | W_in2]
    bi2 = bi2_ref[...]      # (1, 3H)   [b_ir2+b_hr2 | b_iz2+b_hz2 | b_in2]
    wh2 = wh2_ref[...]      # (H, 3H)   [W_hr2 | W_hz2 | W_hn2]
    bhn2 = bhn2_ref[...]    # (1, H)    b_hn2

    def dot(a, b):
        return jnp.dot(a, b, preferred_element_type=jnp.float32)

    def step(t, carry):
        h0, h1 = carry

        # ---- GRU layer 1 (input-gate term precomputed outside the kernel) ----
        gi1 = gi1_ref[t]                                     # (B, 3H)
        gh1 = dot(h0, wh1)                                   # (B, 3H)
        r1 = jax.nn.sigmoid(gi1[:, :H] + gh1[:, :H])
        z1 = jax.nn.sigmoid(gi1[:, H:2 * H] + gh1[:, H:2 * H])
        n1 = jnp.tanh(gi1[:, 2 * H:] + r1 * (gh1[:, 2 * H:] + bhn1))
        h0 = (1.0 - z1) * n1 + z1 * h0

        # ---- GRU layer 2 (fused per-path gate matmuls) ----
        gi2 = dot(h0, wi2) + bi2                             # (B, 3H)
        gh2 = dot(h1, wh2)                                   # (B, 3H)
        r2 = jax.nn.sigmoid(gi2[:, :H] + gh2[:, :H])
        z2 = jax.nn.sigmoid(gi2[:, H:2 * H] + gh2[:, H:2 * H])
        n2 = jnp.tanh(gi2[:, 2 * H:] + r2 * (gh2[:, 2 * H:] + bhn2))
        h1 = (1.0 - z2) * n2 + z2 * h1
        return h0, h1

    # Fully unrolled (static T) so gi1_ref[t] becomes static indexing and the
    # LLO scheduler sees the whole recurrence.
    _, h1 = lax.fori_loop(0, T, step, (h0_ref[...], h1_ref[...]), unroll=True)

    # ---- Final linear head (single unconditional write) ----
    out_ref[...] = dot(h1, wout_ref[...]) + bout_ref[...]


# --------------------------------- wrapper ----------------------------------

def discriminator_forward(x, hidden0, hidden1, params, *, batch_block=None):
    B, T = x.shape
    H = hidden0.shape[1]
    O = params["wout"].shape[1]

    bb = B if batch_block is None else batch_block
    assert B % bb == 0, "batch_block must divide the batch size"
    n_blocks = B // bb

    # Precompute the layer-1 input-gate pre-activations outside the kernel:
    #   gi1[t] = x[:, t:t+1] @ W_ih1.T + b_ih1 + [b_hr1 | b_hz1 | 0]
    # (rank-1 outer product since input_dim == 1; b_hn1 stays inside r1*(...)).
    gi1 = (x.T[:, :, None] * params["wi1_row"][None, :, :]
           + params["bi1"][None, :, :]).astype(jnp.float32)          # (T, B, 3H)

    weight_inputs = (params["wh1"], params["bhn1"],
                     params["wi2"], params["bi2"],
                     params["wh2"], params["bhn2"],
                     params["wout"], params["bout"])

    in_specs = [
        pl.BlockSpec((T, bb, 3 * H), lambda i: (0, i, 0)),   # gi1
        pl.BlockSpec((bb, H), lambda i: (i, 0)),             # hidden0
        pl.BlockSpec((bb, H), lambda i: (i, 0)),             # hidden1
    ] + [pl.BlockSpec(w.shape, lambda i: (0, 0)) for w in weight_inputs]

    return pl.pallas_call(
        discriminator_kernel,
        out_shape=jax.ShapeDtypeStruct((B, O), jnp.float32),
        grid=(n_blocks,),
        in_specs=in_specs,
        out_specs=pl.BlockSpec((bb, O), lambda i: (i, 0)),
        compiler_params=pltpu.CompilerParams(
            dimension_semantics=("parallel",)),
    )(gi1, hidden0, hidden1, *weight_inputs)


# ----------------------- parameter init (deterministic) -----------------------

def init_raw_params(key, input_dim, hidden_dim, output_dim):
    """PyTorch-style GRUCell / Linear parameters (uniform(-1/sqrt(H), 1/sqrt(H)))."""
    H = hidden_dim
    bound = 1.0 / np.sqrt(H)
    ks = jax.random.split(key, 10)
    u = lambda kk, shape: jax.random.uniform(kk, shape, jnp.float32, -bound, bound)
    return dict(
        w_ih1=u(ks[0], (3 * H, input_dim)), w_hh1=u(ks[1], (3 * H, H)),
        b_ih1=u(ks[2], (3 * H,)),           b_hh1=u(ks[3], (3 * H,)),
        w_ih2=u(ks[4], (3 * H, H)),         w_hh2=u(ks[5], (3 * H, H)),
        b_ih2=u(ks[6], (3 * H,)),           b_hh2=u(ks[7], (3 * H,)),
        w_out=u(ks[8], (output_dim, H)),    b_out=u(ks[9], (output_dim,)),
    )


def pack_params(raw, hidden_dim):
    """Pack gate-stacked PyTorch params into fused, (in, out)-oriented arrays."""
    H = hidden_dim

    def split3(w):  # (3H, in) -> three (in, H) transposed blocks
        return w[:H].T, w[H:2 * H].T, w[2 * H:].T

    wir1, wiz1, win1 = split3(raw["w_ih1"])   # each (1, H)
    whr1, whz1, whn1 = split3(raw["w_hh1"])   # each (H, H)
    wir2, wiz2, win2 = split3(raw["w_ih2"])   # each (H, H)
    whr2, whz2, whn2 = split3(raw["w_hh2"])   # each (H, H)
    bih1, bhh1 = raw["b_ih1"], raw["b_hh1"]
    bih2, bhh2 = raw["b_ih2"], raw["b_hh2"]

    wi1_row = jnp.concatenate([wir1, wiz1, win1], axis=1)                 # (1, 3H)
    bi1 = (bih1 + jnp.concatenate(
        [bhh1[:H], bhh1[H:2 * H], jnp.zeros((H,), jnp.float32)]))[None]   # (1, 3H)
    wh1 = jnp.concatenate([whr1, whz1, whn1], axis=1)                     # (H, 3H)
    bhn1 = bhh1[2 * H:][None, :]                                          # (1, H)

    wi2 = jnp.concatenate([wir2, wiz2, win2], axis=1)                     # (H, 3H)
    bi2 = jnp.concatenate([bih2[:H] + bhh2[:H],
                           bih2[H:2 * H] + bhh2[H:2 * H],
                           bih2[2 * H:]])[None, :]                        # (1, 3H)
    wh2 = jnp.concatenate([whr2, whz2, whn2], axis=1)                     # (H, 3H)
    bhn2 = bhh2[2 * H:][None, :]                                          # (1, H)

    wout = raw["w_out"].T                 # (H, O)
    bout = raw["b_out"][None, :]          # (1, O)

    return dict(wi1_row=wi1_row, bi1=bi1, wh1=wh1, bhn1=bhn1,
                wi2=wi2, bi2=bi2, wh2=wh2, bhn2=bhn2, wout=wout, bout=bout)


# ----------------------------- pure-JAX reference -----------------------------

def _gru_cell_ref(x, h, w_ih, w_hh, b_ih, b_hh):
    H = h.shape[1]
    gi = x @ w_ih.T + b_ih
    gh = h @ w_hh.T + b_hh
    r = jax.nn.sigmoid(gi[:, :H] + gh[:, :H])
    z = jax.nn.sigmoid(gi[:, H:2 * H] + gh[:, H:2 * H])
    n = jnp.tanh(gi[:, 2 * H:] + r * gh[:, 2 * H:])
    return (1.0 - z) * n + z * h


def discriminator_reference(x, h0, h1, raw):
    s0, s1 = h0, h1
    T = x.shape[1]
    for i in range(T):
        xi = x[:, i][:, None]
        s0 = _gru_cell_ref(xi, s0, raw["w_ih1"], raw["w_hh1"], raw["b_ih1"], raw["b_hh1"])
        s1 = _gru_cell_ref(s0, s1, raw["w_ih2"], raw["w_hh2"], raw["b_ih2"], raw["b_hh2"])
    return s1 @ raw["w_out"].T + raw["b_out"]


# ----------------------------------- main --------------------------------------

if __name__ == "__main__":
    B, T, H = 8, 8, 32
    input_dim, output_dim = 1, 1

    key = jax.random.PRNGKey(0)
    k_x, k_h0, k_h1, k_p = jax.random.split(key, 4)

    x = jax.random.normal(k_x, (B, T), jnp.float32)       # sequence of scalars per batch
    hidden0 = jax.random.normal(k_h0, (B, H), jnp.float32)
    hidden1 = jax.random.normal(k_h1, (B, H), jnp.float32)

    raw = init_raw_params(k_p, input_dim, H, output_dim)
    params = pack_params(raw, H)

    out = discriminator_forward(x, hidden0, hidden1, params)
    out = jax.block_until_ready(out)

    ref = discriminator_reference(x, hidden0, hidden1, raw)
    np.testing.assert_allclose(np.asarray(out), np.asarray(ref), rtol=1e-4, atol=1e-5)

    print("KERNEL_OK")
</pallas_src>

<mosaic_0001>
module attributes {stable_mosaic.version = 11 : i64} {
  func.func @discriminator_kernel(%arg0: i32, %arg1: memref<8x8x96xf32, #tpu.memory_space<vmem>>, %arg2: memref<8x32xf32, #tpu.memory_space<vmem>>, %arg3: memref<8x32xf32, #tpu.memory_space<vmem>>, %arg4: memref<32x96xf32, #tpu.memory_space<vmem>>, %arg5: memref<1x32xf32, #tpu.memory_space<vmem>>, %arg6: memref<32x96xf32, #tpu.memory_space<vmem>>, %arg7: memref<1x96xf32, #tpu.memory_space<vmem>>, %arg8: memref<32x96xf32, #tpu.memory_space<vmem>>, %arg9: memref<1x32xf32, #tpu.memory_space<vmem>>, %arg10: memref<32x1xf32, #tpu.memory_space<vmem>>, %arg11: memref<1x1xf32, #tpu.memory_space<vmem>>, %arg12: memref<8x1xf32, #tpu.memory_space<vmem>>) attributes {dimension_semantics = [#tpu.dimension_semantics<parallel>], iteration_bounds = array<i64: 1>, scalar_prefetch = 0 : i64, scratch_operands = 0 : i64, tpu.core_type = #tpu.core_type<tc>, window_params = [{transform_indices = @transform_0, window_bounds = array<i64: 8, 8, 96>}, {transform_indices = @transform_1, window_bounds = array<i64: 8, 32>}, {transform_indices = @transform_2, window_bounds = array<i64: 8, 32>}, {pipeline_mode = #tpu.pipeline_mode<synchronous>, transform_indices = @transform_3, window_bounds = array<i64: 32, 96>}, {pipeline_mode = #tpu.pipeline_mode<synchronous>, transform_indices = @transform_4, window_bounds = array<i64: 1, 32>}, {pipeline_mode = #tpu.pipeline_mode<synchronous>, transform_indices = @transform_5, window_bounds = array<i64: 32, 96>}, {pipeline_mode = #tpu.pipeline_mode<synchronous>, transform_indices = @transform_6, window_bounds = array<i64: 1, 96>}, {pipeline_mode = #tpu.pipeline_mode<synchronous>, transform_indices = @transform_7, window_bounds = array<i64: 32, 96>}, {pipeline_mode = #tpu.pipeline_mode<synchronous>, transform_indices = @transform_8, window_bounds = array<i64: 1, 32>}, {pipeline_mode = #tpu.pipeline_mode<synchronous>, transform_indices = @transform_9, window_bounds = array<i64: 32, 1>}, {pipeline_mode = #tpu.pipeline_mode<synchronous>, transform_indices = @transform_10, window_bounds = array<i64: 1, 1>}, {transform_indices = @transform_11, window_bounds = array<i64: 8, 1>}]} {
    %c0 = arith.constant 0 : index
    %c0_0 = arith.constant 0 : index
    %0 = vector.load %arg4[%c0, %c0_0] : memref<32x96xf32, #tpu.memory_space<vmem>>, vector<32x96xf32>
    %c0_1 = arith.constant 0 : index
    %c0_2 = arith.constant 0 : index
    %1 = vector.load %arg5[%c0_1, %c0_2] : memref<1x32xf32, #tpu.memory_space<vmem>>, vector<1x32xf32>
    %c0_3 = arith.constant 0 : index
    %c0_4 = arith.constant 0 : index
    %2 = vector.load %arg6[%c0_3, %c0_4] : memref<32x96xf32, #tpu.memory_space<vmem>>, vector<32x96xf32>
    %c0_5 = arith.constant 0 : index
    %c0_6 = arith.constant 0 : index
    %3 = vector.load %arg7[%c0_5, %c0_6] : memref<1x96xf32, #tpu.memory_space<vmem>>, vector<1x96xf32>
    %c0_7 = arith.constant 0 : index
    %c0_8 = arith.constant 0 : index
    %4 = vector.load %arg8[%c0_7, %c0_8] : memref<32x96xf32, #tpu.memory_space<vmem>>, vector<32x96xf32>
    %c0_9 = arith.constant 0 : index
    %c0_10 = arith.constant 0 : index
    %5 = vector.load %arg9[%c0_9, %c0_10] : memref<1x32xf32, #tpu.memory_space<vmem>>, vector<1x32xf32>
    %c0_11 = arith.constant 0 : index
    %c0_12 = arith.constant 0 : index
    %6 = vector.load %arg2[%c0_11, %c0_12] : memref<8x32xf32, #tpu.memory_space<vmem>>, vector<8x32xf32>
    %c0_13 = arith.constant 0 : index
    %c0_14 = arith.constant 0 : index
    %7 = vector.load %arg3[%c0_13, %c0_14] : memref<8x32xf32, #tpu.memory_space<vmem>>, vector<8x32xf32>
    %c0_i32 = arith.constant 0 : i32
    %8 = arith.index_cast %c0_i32 : i32 to index
    %c0_15 = arith.constant 0 : index
    %c0_16 = arith.constant 0 : index
    %9 = vector.load %arg1[%8, %c0_15, %c0_16] : memref<8x8x96xf32, #tpu.memory_space<vmem>>, vector<1x8x96xf32>
    %10 = vector.shape_cast %9 : vector<1x8x96xf32> to vector<8x96xf32>
    %cst = arith.constant dense<0.000000e+00> : vector<8x96xf32>
    %11 = tpu.matmul %6, %0, %cst {dimension_numbers = #tpu.dot_dimension_numbers<[1], [0], [0], [1], [0, 0, 1, 1], [], []>} : vector<8x32xf32>, vector<32x96xf32>, vector<8x96xf32> -> vector<8x96xf32>
    %12 = vector.extract_strided_slice %10 {offsets = [0, 0], sizes = [8, 32], strides = [1, 1]} : vector<8x96xf32> to vector<8x32xf32>
    %13 = vector.extract_strided_slice %11 {offsets = [0, 0], sizes = [8, 32], strides = [1, 1]} : vector<8x96xf32> to vector<8x32xf32>
    %14 = arith.addf %12, %13 : vector<8x32xf32>
    %15 = arith.negf %14 : vector<8x32xf32>
    %16 = math.exp %15 : vector<8x32xf32>
    %cst_17 = arith.constant 1.000000e+00 : f32
    %17 = vector.broadcast %cst_17 : f32 to vector<8x32xf32>
    %18 = arith.addf %17, %16 : vector<8x32xf32>
    %19 = arith.divf %17, %18 : vector<8x32xf32>
    %20 = vector.extract_strided_slice %10 {offsets = [0, 32], sizes = [8, 32], strides = [1, 1]} : vector<8x96xf32> to vector<8x32xf32>
    %21 = vector.extract_strided_slice %11 {offsets = [0, 32], sizes = [8, 32], strides = [1, 1]} : vector<8x96xf32> to vector<8x32xf32>
    %22 = arith.addf %20, %21 : vector<8x32xf32>
    %23 = arith.negf %22 : vector<8x32xf32>
    %24 = math.exp %23 : vector<8x32xf32>
    %cst_18 = arith.constant 1.000000e+00 : f32
    %25 = vector.broadcast %cst_18 : f32 to vector<8x32xf32>
    %26 = arith.addf %25, %24 : vector<8x32xf32>
    %27 = arith.divf %25, %26 : vector<8x32xf32>
    %28 = vector.extract_strided_slice %10 {offsets = [0, 64], sizes = [8, 32], strides = [1, 1]} : vector<8x96xf32> to vector<8x32xf32>
    %29 = vector.extract_strided_slice %11 {offsets = [0, 64], sizes = [8, 32], strides = [1, 1]} : vector<8x96xf32> to vector<8x32xf32>
    %30 = vector.broadcast %1 : vector<1x32xf32> to vector<8x32xf32>
    %31 = arith.addf %29, %30 : vector<8x32xf32>
    %32 = arith.mulf %19, %31 : vector<8x32xf32>
    %33 = arith.addf %28, %32 : vector<8x32xf32>
    %34 = math.tanh %33 : vector<8x32xf32>
    %cst_19 = arith.constant 1.000000e+00 : f32
    %35 = vector.broadcast %cst_19 : f32 to vector<8x32xf32>
    %36 = arith.subf %35, %27 : vector<8x32xf32>
    %37 = arith.mulf %36, %34 : vector<8x32xf32>
    %38 = arith.mulf %27, %6 : vector<8x32xf32>
    %39 = arith.addf %37, %38 : vector<8x32xf32>
    %cst_20 = arith.constant dense<0.000000e+00> : vector<8x96xf32>
    %40 = tpu.matmul %39, %2, %cst_20 {dimension_numbers = #tpu.dot_dimension_numbers<[1], [0], [0], [1], [0, 0, 1, 1], [], []>} : vector<8x32xf32>, vector<32x96xf32>, vector<8x96xf32> -> vector<8x96xf32>
    %41 = vector.broadcast %3 : vector<1x96xf32> to vector<8x96xf32>
    %42 = arith.addf %40, %41 : vector<8x96xf32>
    %cst_21 = arith.constant dense<0.000000e+00> : vector<8x96xf32>
    %43 = tpu.matmul %7, %4, %cst_21 {dimension_numbers = #tpu.dot_dimension_numbers<[1], [0], [0], [1], [0, 0, 1, 1], [], []>} : vector<8x32xf32>, vector<32x96xf32>, vector<8x96xf32> -> vector<8x96xf32>
    %44 = vector.extract_strided_slice %42 {offsets = [0, 0], sizes = [8, 32], strides = [1, 1]} : vector<8x96xf32> to vector<8x32xf32>
    %45 = vector.extract_strided_slice %43 {offsets = [0, 0], sizes = [8, 32], strides = [1, 1]} : vector<8x96xf32> to vector<8x32xf32>
    %46 = arith.addf %44, %45 : vector<8x32xf32>
    %47 = arith.negf %46 : vector<8x32xf32>
    %48 = math.exp %47 : vector<8x32xf32>
    %cst_22 = arith.constant 1.000000e+00 : f32
    %49 = vector.broadcast %cst_22 : f32 to vector<8x32xf32>
    %50 = arith.addf %49, %48 : vector<8x32xf32>
    %51 = arith.divf %49, %50 : vector<8x32xf32>
    %52 = vector.extract_strided_slice %42 {offsets = [0, 32], sizes = [8, 32], strides = [1, 1]} : vector<8x96xf32> to vector<8x32xf32>
    %53 = vector.extract_strided_slice %43 {offsets = [0, 32], sizes = [8, 32], strides = [1, 1]} : vector<8x96xf32> to vector<8x32xf32>
    %54 = arith.addf %52, %53 : vector<8x32xf32>
    %55 = arith.negf %54 : vector<8x32xf32>
    %56 = math.exp %55 : vector<8x32xf32>
    %cst_23 = arith.constant 1.000000e+00 : f32
    %57 = vector.broadcast %cst_23 : f32 to vector<8x32xf32>
    %58 = arith.addf %57, %56 : vector<8x32xf32>
    %59 = arith.divf %57, %58 : vector<8x32xf32>
    %60 = vector.extract_strided_slice %42 {offsets = [0, 64], sizes = [8, 32], strides = [1, 1]} : vector<8x96xf32> to vector<8x32xf32>
    %61 = vector.extract_strided_slice %43 {offsets = [0, 64], sizes = [8, 32], strides = [1, 1]} : vector<8x96xf32> to vector<8x32xf32>
    %62 = vector.broadcast %5 : vector<1x32xf32> to vector<8x32xf32>
    %63 = arith.addf %61, %62 : vector<8x32xf32>
    %64 = arith.mulf %51, %63 : vector<8x32xf32>
    %65 = arith.addf %60, %64 : vector<8x32xf32>
    %66 = math.tanh %65 : vector<8x32xf32>
    %cst_24 = arith.constant 1.000000e+00 : f32
    %67 = vector.broadcast %cst_24 : f32 to vector<8x32xf32>
    %68 = arith.subf %67, %59 : vector<8x32xf32>
    %69 = arith.mulf %68, %66 : vector<8x32xf32>
    %70 = arith.mulf %59, %7 : vector<8x32xf32>
    %71 = arith.addf %69, %70 : vector<8x32xf32>
    %c1_i32 = arith.constant 1 : i32
    %72 = arith.index_cast %c1_i32 : i32 to index
    %c0_25 = arith.constant 0 : index
    %c0_26 = arith.constant 0 : index
    %73 = vector.load %arg1[%72, %c0_25, %c0_26] : memref<8x8x96xf32, #tpu.memory_space<vmem>>, vector<1x8x96xf32>
    %74 = vector.shape_cast %73 : vector<1x8x96xf32> to vector<8x96xf32>
    %cst_27 = arith.constant dense<0.000000e+00> : vector<8x96xf32>
    %75 = tpu.matmul %39, %0, %cst_27 {dimension_numbers = #tpu.dot_dimension_numbers<[1], [0], [0], [1], [0, 0, 1, 1], [], []>} : vector<8x32xf32>, vector<32x96xf32>, vector<8x96xf32> -> vector<8x96xf32>
    %76 = vector.extract_strided_slice %74 {offsets = [0, 0], sizes = [8, 32], strides = [1, 1]} : vector<8x96xf32> to vector<8x32xf32>
    %77 = vector.extract_strided_slice %75 {offsets = [0, 0], sizes = [8, 32], strides = [1, 1]} : vector<8x96xf32> to vector<8x32xf32>
    %78 = arith.addf %76, %77 : vector<8x32xf32>
    %79 = arith.negf %78 : vector<8x32xf32>
    %80 = math.exp %79 : vector<8x32xf32>
    %cst_28 = arith.constant 1.000000e+00 : f32
    %81 = vector.broadcast %cst_28 : f32 to vector<8x32xf32>
    %82 = arith.addf %81, %80 : vector<8x32xf32>
    %83 = arith.divf %81, %82 : vector<8x32xf32>
    %84 = vector.extract_strided_slice %74 {offsets = [0, 32], sizes = [8, 32], strides = [1, 1]} : vector<8x96xf32> to vector<8x32xf32>
    %85 = vector.extract_strided_slice %75 {offsets = [0, 32], sizes = [8, 32], strides = [1, 1]} : vector<8x96xf32> to vector<8x32xf32>
    %86 = arith.addf %84, %85 : vector<8x32xf32>
    %87 = arith.negf %86 : vector<8x32xf32>
    %88 = math.exp %87 : vector<8x32xf32>
    %cst_29 = arith.constant 1.000000e+00 : f32
    %89 = vector.broadcast %cst_29 : f32 to vector<8x32xf32>
    %90 = arith.addf %89, %88 : vector<8x32xf32>
    %91 = arith.divf %89, %90 : vector<8x32xf32>
    %92 = vector.extract_strided_slice %74 {offsets = [0, 64], sizes = [8, 32], strides = [1, 1]} : vector<8x96xf32> to vector<8x32xf32>
    %93 = vector.extract_strided_slice %75 {offsets = [0, 64], sizes = [8, 32], strides = [1, 1]} : vector<8x96xf32> to vector<8x32xf32>
    %94 = vector.broadcast %1 : vector<1x32xf32> to vector<8x32xf32>
    %95 = arith.addf %93, %94 : vector<8x32xf32>
    %96 = arith.mulf %83, %95 : vector<8x32xf32>
    %97 = arith.addf %92, %96 : vector<8x32xf32>
    %98 = math.tanh %97 : vector<8x32xf32>
    %cst_30 = arith.constant 1.000000e+00 : f32
    %99 = vector.broadcast %cst_30 : f32 to vector<8x32xf32>
    %100 = arith.subf %99, %91 : vector<8x32xf32>
    %101 = arith.mulf %100, %98 : vector<8x32xf32>
    %102 = arith.mulf %91, %39 : vector<8x32xf32>
    %103 = arith.addf %101, %102 : vector<8x32xf32>
    %cst_31 = arith.constant dense<0.000000e+00> : vector<8x96xf32>
    %104 = tpu.matmul %103, %2, %cst_31 {dimension_numbers = #tpu.dot_dimension_numbers<[1], [0], [0], [1], [0, 0, 1, 1], [], []>} : vector<8x32xf32>, vector<32x96xf32>, vector<8x96xf32> -> vector<8x96xf32>
    %105 = vector.broadcast %3 : vector<1x96xf32> to vector<8x96xf32>
    %106 = arith.addf %104, %105 : vector<8x96xf32>
    %cst_32 = arith.constant dense<0.000000e+00> : vector<8x96xf32>
    %107 = tpu.matmul %71, %4, %cst_32 {dimension_numbers = #tpu.dot_dimension_numbers<[1], [0], [0], [1], [0, 0, 1, 1], [], []>} : vector<8x32xf32>, vector<32x96xf32>, vector<8x96xf32> -> vector<8x96xf32>
    %108 = vector.extract_strided_slice %106 {offsets = [0, 0], sizes = [8, 32], strides = [1, 1]} : vector<8x96xf32> to vector<8x32xf32>
    %109 = vector.extract_strided_slice %107 {offsets = [0, 0], sizes = [8, 32], strides = [1, 1]} : vector<8x96xf32> to vector<8x32xf32>
    %110 = arith.addf %108, %109 : vector<8x32xf32>
    %111 = arith.negf %110 : vector<8x32xf32>
    %112 = math.exp %111 : vector<8x32xf32>
    %cst_33 = arith.constant 1.000000e+00 : f32
    %113 = vector.broadcast %cst_33 : f32 to vector<8x32xf32>
    %114 = arith.addf %113, %112 : vector<8x32xf32>
    %115 = arith.divf %113, %114 : vector<8x32xf32>
    %116 = vector.extract_strided_slice %106 {offsets = [0, 32], sizes = [8, 32], strides = [1, 1]} : vector<8x96xf32> to vector<8x32xf32>
    %117 = vector.extract_strided_slice %107 {offsets = [0, 32], sizes = [8, 32], strides = [1, 1]} : vector<8x96xf32> to vector<8x32xf32>
    %118 = arith.addf %116, %117 : vector<8x32xf32>
    %119 = arith.negf %118 : vector<8x32xf32>
    %120 = math.exp %119 : vector<8x32xf32>
    %cst_34 = arith.constant 1.000000e+00 : f32
    %121 = vector.broadcast %cst_34 : f32 to vector<8x32xf32>
    %122 = arith.addf %121, %120 : vector<8x32xf32>
    %123 = arith.divf %121, %122 : vector<8x32xf32>
    %124 = vector.extract_strided_slice %106 {offsets = [0, 64], sizes = [8, 32], strides = [1, 1]} : vector<8x96xf32> to vector<8x32xf32>
    %125 = vector.extract_strided_slice %107 {offsets = [0, 64], sizes = [8, 32], strides = [1, 1]} : vector<8x96xf32> to vector<8x32xf32>
    %126 = vector.broadcast %5 : vector<1x32xf32> to vector<8x32xf32>
    %127 = arith.addf %125, %126 : vector<8x32xf32>
    %128 = arith.mulf %115, %127 : vector<8x32xf32>
    %129 = arith.addf %124, %128 : vector<8x32xf32>
    %130 = math.tanh %129 : vector<8x32xf32>
    %cst_35 = arith.constant 1.000000e+00 : f32
    %131 = vector.broadcast %cst_35 : f32 to vector<8x32xf32>
    %132 = arith.subf %131, %123 : vector<8x32xf32>
    %133 = arith.mulf %132, %130 : vector<8x32xf32>
    %134 = arith.mulf %123, %71 : vector<8x32xf32>
    %135 = arith.addf %133, %134 : vector<8x32xf32>
    %c2_i32 = arith.constant 2 : i32
    %136 = arith.index_cast %c2_i32 : i32 to index
    %c0_36 = arith.constant 0 : index
    %c0_37 = arith.constant 0 : index
    %137 = vector.load %arg1[%136, %c0_36, %c0_37] : memref<8x8x96xf32, #tpu.memory_space<vmem>>, vector<1x8x96xf32>
    %138 = vector.shape_cast %137 : vector<1x8x96xf32> to vector<8x96xf32>
    %cst_38 = arith.constant dense<0.000000e+00> : vector<8x96xf32>
    %139 = tpu.matmul %103, %0, %cst_38 {dimension_numbers = #tpu.dot_dimension_numbers<[1], [0], [0], [1], [0, 0, 1, 1], [], []>} : vector<8x32xf32>, vector<32x96xf32>, vector<8x96xf32> -> vector<8x96xf32>
    %140 = vector.extract_strided_slice %138 {offsets = [0, 0], sizes = [8, 32], strides = [1, 1]} : vector<8x96xf32> to vector<8x32xf32>
    %141 = vector.extract_strided_slice %139 {offsets = [0, 0], sizes = [8, 32], strides = [1, 1]} : vector<8x96xf32> to vector<8x32xf32>
    %142 = arith.addf %140, %141 : vector<8x32xf32>
    %143 = arith.negf %142 : vector<8x32xf32>
    %144 = math.exp %143 : vector<8x32xf32>
    %cst_39 = arith.constant 1.000000e+00 : f32
    %145 = vector.broadcast %cst_39 : f32 to vector<8x32xf32>
    %146 = arith.addf %145, %144 : vector<8x32xf32>
    %147 = arith.divf %145, %146 : vector<8x32xf32>
    %148 = vector.extract_strided_slice %138 {offsets = [0, 32], sizes = [8, 32], strides = [1, 1]} : vector<8x96xf32> to vector<8x32xf32>
    %149 = vector.extract_strided_slice %139 {offsets = [0, 32], sizes = [8, 32], strides = [1, 1]} : vector<8x96xf32> to vector<8x32xf32>
    %150 = arith.addf %148, %149 : vector<8x32xf32>
    %151 = arith.negf %150 : vector<8x32xf32>
    %152 = math.exp %151 : vector<8x32xf32>
    %cst_40 = arith.constant 1.000000e+00 : f32
    %153 = vector.broadcast %cst_40 : f32 to vector<8x32xf32>
    %154 = arith.addf %153, %152 : vector<8x32xf32>
    %155 = arith.divf %153, %154 : vector<8x32xf32>
    %156 = vector.extract_strided_slice %138 {offsets = [0, 64], sizes = [8, 32], strides = [1, 1]} : vector<8x96xf32> to vector<8x32xf32>
    %157 = vector.extract_strided_slice %139 {offsets = [0, 64], sizes = [8, 32], strides = [1, 1]} : vector<8x96xf32> to vector<8x32xf32>
    %158 = vector.broadcast %1 : vector<1x32xf32> to vector<8x32xf32>
    %159 = arith.addf %157, %158 : vector<8x32xf32>
    %160 = arith.mulf %147, %159 : vector<8x32xf32>
    %161 = arith.addf %156, %160 : vector<8x32xf32>
    %162 = math.tanh %161 : vector<8x32xf32>
    %cst_41 = arith.constant 1.000000e+00 : f32
    %163 = vector.broadcast %cst_41 : f32 to vector<8x32xf32>
    %164 = arith.subf %163, %155 : vector<8x32xf32>
    %165 = arith.mulf %164, %162 : vector<8x32xf32>
    %166 = arith.mulf %155, %103 : vector<8x32xf32>
    %167 = arith.addf %165, %166 : vector<8x32xf32>
    %cst_42 = arith.constant dense<0.000000e+00> : vector<8x96xf32>
    %168 = tpu.matmul %167, %2, %cst_42 {dimension_numbers = #tpu.dot_dimension_numbers<[1], [0], [0], [1], [0, 0, 1, 1], [], []>} : vector<8x32xf32>, vector<32x96xf32>, vector<8x96xf32> -> vector<8x96xf32>
    %169 = vector.broadcast %3 : vector<1x96xf32> to vector<8x96xf32>
    %170 = arith.addf %168, %169 : vector<8x96xf32>
    %cst_43 = arith.constant dense<0.000000e+00> : vector<8x96xf32>
    %171 = tpu.matmul %135, %4, %cst_43 {dimension_numbers = #tpu.dot_dimension_numbers<[1], [0], [0], [1], [0, 0, 1, 1], [], []>} : vector<8x32xf32>, vector<32x96xf32>, vector<8x96xf32> -> vector<8x96xf32>
    %172 = vector.extract_strided_slice %170 {offsets = [0, 0], sizes = [8, 32], strides = [1, 1]} : vector<8x96xf32> to vector<8x32xf32>
    %173 = vector.extract_strided_slice %171 {offsets = [0, 0], sizes = [8, 32], strides = [1, 1]} : vector<8x96xf32> to vector<8x32xf32>
    %174 = arith.addf %172, %173 : vector<8x32xf32>
    %175 = arith.negf %174 : vector<8x32xf32>
    %176 = math.exp %175 : vector<8x32xf32>
    %cst_44 = arith.constant 1.000000e+00 : f32
    %177 = vector.broadcast %cst_44 : f32 to vector<8x32xf32>
    %178 = arith.addf %177, %176 : vector<8x32xf32>
    %179 = arith.divf %177, %178 : vector<8x32xf32>
    %180 = vector.extract_strided_slice %170 {offsets = [0, 32], sizes = [8, 32], strides = [1, 1]} : vector<8x96xf32> to vector<8x32xf32>
    %181 = vector.extract_strided_slice %171 {offsets = [0, 32], sizes = [8, 32], strides = [1, 1]} : vector<8x96xf32> to vector<8x32xf32>
    %182 = arith.addf %180, %181 : vector<8x32xf32>
    %183 = arith.negf %182 : vector<8x32xf32>
    %184 = math.exp %183 : vector<8x32xf32>
    %cst_45 = arith.constant 1.000000e+00 : f32
    %185 = vector.broadcast %cst_45 : f32 to vector<8x32xf32>
    %186 = arith.addf %185, %184 : vector<8x32xf32>
    %187 = arith.divf %185, %186 : vector<8x32xf32>
    %188 = vector.extract_strided_slice %170 {offsets = [0, 64], sizes = [8, 32], strides = [1, 1]} : vector<8x96xf32> to vector<8x32xf32>
    %189 = vector.extract_strided_slice %171 {offsets = [0, 64], sizes = [8, 32], strides = [1, 1]} : vector<8x96xf32> to vector<8x32xf32>
    %190 = vector.broadcast %5 : vector<1x32xf32> to vector<8x32xf32>
    %191 = arith.addf %189, %190 : vector<8x32xf32>
    %192 = arith.mulf %179, %191 : vector<8x32xf32>
    %193 = arith.addf %188, %192 : vector<8x32xf32>
    %194 = math.tanh %193 : vector<8x32xf32>
    %cst_46 = arith.constant 1.000000e+00 : f32
    %195 = vector.broadcast %cst_46 : f32 to vector<8x32xf32>
    %196 = arith.subf %195, %187 : vector<8x32xf32>
    %197 = arith.mulf %196, %194 : vector<8x32xf32>
    %198 = arith.mulf %187, %135 : vector<8x32xf32>
    %199 = arith.addf %197, %198 : vector<8x32xf32>
    %c3_i32 = arith.constant 3 : i32
    %200 = arith.index_cast %c3_i32 : i32 to index
    %c0_47 = arith.constant 0 : index
    %c0_48 = arith.constant 0 : index
    %201 = vector.load %arg1[%200, %c0_47, %c0_48] : memref<8x8x96xf32, #tpu.memory_space<vmem>>, vector<1x8x96xf32>
    %202 = vector.shape_cast %201 : vector<1x8x96xf32> to vector<8x96xf32>
    %cst_49 = arith.constant dense<0.000000e+00> : vector<8x96xf32>
    %203 = tpu.matmul %167, %0, %cst_49 {dimension_numbers = #tpu.dot_dimension_numbers<[1], [0], [0], [1], [0, 0, 1, 1], [], []>} : vector<8x32xf32>, vector<32x96xf32>, vector<8x96xf32> -> vector<8x96xf32>
    %204 = vector.extract_strided_slice %202 {offsets = [0, 0], sizes = [8, 32], strides = [1, 1]} : vector<8x96xf32> to vector<8x32xf32>
    %205 = vector.extract_strided_slice %203 {offsets = [0, 0], sizes = [8, 32], strides = [1, 1]} : vector<8x96xf32> to vector<8x32xf32>
    %206 = arith.addf %204, %205 : vector<8x32xf32>
    %207 = arith.negf %206 : vector<8x32xf32>
    %208 = math.exp %207 : vector<8x32xf32>
    %cst_50 = arith.constant 1.000000e+00 : f32
    %209 = vector.broadcast %cst_50 : f32 to vector<8x32xf32>
    %210 = arith.addf %209, %208 : vector<8x32xf32>
    %211 = arith.divf %209, %210 : vector<8x32xf32>
    %212 = vector.extract_strided_slice %202 {offsets = [0, 32], sizes = [8, 32], strides = [1, 1]} : vector<8x96xf32> to vector<8x32xf32>
    %213 = vector.extract_strided_slice %203 {offsets = [0, 32], sizes = [8, 32], strides = [1, 1]} : vector<8x96xf32> to vector<8x32xf32>
    %214 = arith.addf %212, %213 : vector<8x32xf32>
    %215 = arith.negf %214 : vector<8x32xf32>
    %216 = math.exp %215 : vector<8x32xf32>
    %cst_51 = arith.constant 1.000000e+00 : f32
    %217 = vector.broadcast %cst_51 : f32 to vector<8x32xf32>
    %218 = arith.addf %217, %216 : vector<8x32xf32>
    %219 = arith.divf %217, %218 : vector<8x32xf32>
    %220 = vector.extract_strided_slice %202 {offsets = [0, 64], sizes = [8, 32], strides = [1, 1]} : vector<8x96xf32> to vector<8x32xf32>
    %221 = vector.extract_strided_slice %203 {offsets = [0, 64], sizes = [8, 32], strides = [1, 1]} : vector<8x96xf32> to vector<8x32xf32>
    %222 = vector.broadcast %1 : vector<1x32xf32> to vector<8x32xf32>
    %223 = arith.addf %221, %222 : vector<8x32xf32>
    %224 = arith.mulf %211, %223 : vector<8x32xf32>
    %225 = arith.addf %220, %224 : vector<8x32xf32>
    %226 = math.tanh %225 : vector<8x32xf32>
    %cst_52 = arith.constant 1.000000e+00 : f32
    %227 = vector.broadcast %cst_52 : f32 to vector<8x32xf32>
    %228 = arith.subf %227, %219 : vector<8x32xf32>
    %229 = arith.mulf %228, %226 : vector<8x32xf32>
    %230 = arith.mulf %219, %167 : vector<8x32xf32>
    %231 = arith.addf %229, %230 : vector<8x32xf32>
    %cst_53 = arith.constant dense<0.000000e+00> : vector<8x96xf32>
    %232 = tpu.matmul %231, %2, %cst_53 {dimension_numbers = #tpu.dot_dimension_numbers<[1], [0], [0], [1], [0, 0, 1, 1], [], []>} : vector<8x32xf32>, vector<32x96xf32>, vector<8x96xf32> -> vector<8x96xf32>
    %233 = vector.broadcast %3 : vector<1x96xf32> to vector<8x96xf32>
    %234 = arith.addf %232, %233 : vector<8x96xf32>
    %cst_54 = arith.constant dense<0.000000e+00> : vector<8x96xf32>
    %235 = tpu.matmul %199, %4, %cst_54 {dimension_numbers = #tpu.dot_dimension_numbers<[1], [0], [0], [1], [0, 0, 1, 1], [], []>} : vector<8x32xf32>, vector<32x96xf32>, vector<8x96xf32> -> vector<8x96xf32>
    %236 = vector.extract_strided_slice %234 {offsets = [0, 0], sizes = [8, 32], strides = [1, 1]} : vector<8x96xf32> to vector<8x32xf32>
    %237 = vector.extract_strided_slice %235 {offsets = [0, 0], sizes = [8, 32], strides = [1, 1]} : vector<8x96xf32> to vector<8x32xf32>
    %238 = arith.addf %236, %237 : vector<8x32xf32>
    %239 = arith.negf %238 : vector<8x32xf32>
    %240 = math.exp %239 : vector<8x32xf32>
    %cst_55 = arith.constant 1.000000e+00 : f32
    %241 = vector.broadcast %cst_55 : f32 to vector<8x32xf32>
    %242 = arith.addf %241, %240 : vector<8x32xf32>
    %243 = arith.divf %241, %242 : vector<8x32xf32>
    %244 = vector.extract_strided_slice %234 {offsets = [0, 32], sizes = [8, 32], strides = [1, 1]} : vector<8x96xf32> to vector<8x32xf32>
    %245 = vector.extract_strided_slice %235 {offsets = [0, 32], sizes = [8, 32], strides = [1, 1]} : vector<8x96xf32> to vector<8x32xf32>
    %246 = arith.addf %244, %245 : vector<8x32xf32>
    %247 = arith.negf %246 : vector<8x32xf32>
    %248 = math.exp %247 : vector<8x32xf32>
    %cst_56 = arith.constant 1.000000e+00 : f32
    %249 = vector.broadcast %cst_56 : f32 to vector<8x32xf32>
    %250 = arith.addf %249, %248 : vector<8x32xf32>
    %251 = arith.divf %249, %250 : vector<8x32xf32>
    %252 = vector.extract_strided_slice %234 {offsets = [0, 64], sizes = [8, 32], strides = [1, 1]} : vector<8x96xf32> to vector<8x32xf32>
    %253 = vector.extract_strided_slice %235 {offsets = [0, 64], sizes = [8, 32], strides = [1, 1]} : vector<8x96xf32> to vector<8x32xf32>
    %254 = vector.broadcast %5 : vector<1x32xf32> to vector<8x32xf32>
    %255 = arith.addf %253, %254 : vector<8x32xf32>
    %256 = arith.mulf %243, %255 : vector<8x32xf32>
    %257 = arith.addf %252, %256 : vector<8x32xf32>
    %258 = math.tanh %257 : vector<8x32xf32>
    %cst_57 = arith.constant 1.000000e+00 : f32
    %259 = vector.broadcast %cst_57 : f32 to vector<8x32xf32>
    %260 = arith.subf %259, %251 : vector<8x32xf32>
    %261 = arith.mulf %260, %258 : vector<8x32xf32>
    %262 = arith.mulf %251, %199 : vector<8x32xf32>
    %263 = arith.addf %261, %262 : vector<8x32xf32>
    %c4_i32 = arith.constant 4 : i32
    %264 = arith.index_cast %c4_i32 : i32 to index
    %c0_58 = arith.constant 0 : index
    %c0_59 = arith.constant 0 : index
    %265 = vector.load %arg1[%264, %c0_58, %c0_59] : memref<8x8x96xf32, #tpu.memory_space<vmem>>, vector<1x8x96xf32>
    %266 = vector.shape_cast %265 : vector<1x8x96xf32> to vector<8x96xf32>
    %cst_60 = arith.constant dense<0.000000e+00> : vector<8x96xf32>
    %267 = tpu.matmul %231, %0, %cst_60 {dimension_numbers = #tpu.dot_dimension_numbers<[1], [0], [0], [1], [0, 0, 1, 1], [], []>} : vector<8x32xf32>, vector<32x96xf32>, vector<8x96xf32> -> vector<8x96xf32>
    %268 = vector.extract_strided_slice %266 {offsets = [0, 0], sizes = [8, 32], strides = [1, 1]} : vector<8x96xf32> to vector<8x32xf32>
    %269 = vector.extract_strided_slice %267 {offsets = [0, 0], sizes = [8, 32], strides = [1, 1]} : vector<8x96xf32> to vector<8x32xf32>
    %270 = arith.addf %268, %269 : vector<8x32xf32>
    %271 = arith.negf %270 : vector<8x32xf32>
    %272 = math.exp %271 : vector<8x32xf32>
    %cst_61 = arith.constant 1.000000e+00 : f32
    %273 = vector.broadcast %cst_61 : f32 to vector<8x32xf32>
    %274 = arith.addf %273, %272 : vector<8x32xf32>
    %275 = arith.divf %273, %274 : vector<8x32xf32>
    %276 = vector.extract_strided_slice %266 {offsets = [0, 32], sizes = [8, 32], strides = [1, 1]} : vector<8x96xf32> to vector<8x32xf32>
    %277 = vector.extract_strided_slice %267 {offsets = [0, 32], sizes = [8, 32], strides = [1, 1]} : vector<8x96xf32> to vector<8x32xf32>
    %278 = arith.addf %276, %277 : vector<8x32xf32>
    %279 = arith.negf %278 : vector<8x32xf32>
    %280 = math.exp %279 : vector<8x32xf32>
    %cst_62 = arith.constant 1.000000e+00 : f32
    %281 = vector.broadcast %cst_62 : f32 to vector<8x32xf32>
    %282 = arith.addf %281, %280 : vector<8x32xf32>
    %283 = arith.divf %281, %282 : vector<8x32xf32>
    %284 = vector.extract_strided_slice %266 {offsets = [0, 64], sizes = [8, 32], strides = [1, 1]} : vector<8x96xf32> to vector<8x32xf32>
    %285 = vector.extract_strided_slice %267 {offsets = [0, 64], sizes = [8, 32], strides = [1, 1]} : vector<8x96xf32> to vector<8x32xf32>
    %286 = vector.broadcast %1 : vector<1x32xf32> to vector<8x32xf32>
    %287 = arith.addf %285, %286 : vector<8x32xf32>
    %288 = arith.mulf %275, %287 : vector<8x32xf32>
    %289 = arith.addf %284, %288 : vector<8x32xf32>
    %290 = math.tanh %289 : vector<8x32xf32>
    %cst_63 = arith.constant 1.000000e+00 : f32
    %291 = vector.broadcast %cst_63 : f32 to vector<8x32xf32>
    %292 = arith.subf %291, %283 : vector<8x32xf32>
    %293 = arith.mulf %292, %290 : vector<8x32xf32>
    %294 = arith.mulf %283, %231 : vector<8x32xf32>
    %295 = arith.addf %293, %294 : vector<8x32xf32>
    %cst_64 = arith.constant dense<0.000000e+00> : vector<8x96xf32>
    %296 = tpu.matmul %295, %2, %cst_64 {dimension_numbers = #tpu.dot_dimension_numbers<[1], [0], [0], [1], [0, 0, 1, 1], [], []>} : vector<8x32xf32>, vector<32x96xf32>, vector<8x96xf32> -> vector<8x96xf32>
    %297 = vector.broadcast %3 : vector<1x96xf32> to vector<8x96xf32>
    %298 = arith.addf %296, %297 : vector<8x96xf32>
    %cst_65 = arith.constant dense<0.000000e+00> : vector<8x96xf32>
    %299 = tpu.matmul %263, %4, %cst_65 {dimension_numbers = #tpu.dot_dimension_numbers<[1], [0], [0], [1], [0, 0, 1, 1], [], []>} : vector<8x32xf32>, vector<32x96xf32>, vector<8x96xf32> -> vector<8x96xf32>
    %300 = vector.extract_strided_slice %298 {offsets = [0, 0], sizes = [8, 32], strides = [1, 1]} : vector<8x96xf32> to vector<8x32xf32>
    %301 = vector.extract_strided_slice %299 {offsets = [0, 0], sizes = [8, 32], strides = [1, 1]} : vector<8x96xf32> to vector<8x32xf32>
    %302 = arith.addf %300, %301 : vector<8x32xf32>
    %303 = arith.negf %302 : vector<8x32xf32>
    %304 = math.exp %303 : vector<8x32xf32>
    %cst_66 = arith.constant 1.000000e+00 : f32
    %305 = vector.broadcast %cst_66 : f32 to vector<8x32xf32>
    %306 = arith.addf %305, %304 : vector<8x32xf32>
    %307 = arith.divf %305, %306 : vector<8x32xf32>
    %308 = vector.extract_strided_slice %298 {offsets = [0, 32], sizes = [8, 32], strides = [1, 1]} : vector<8x96xf32> to vector<8x32xf32>
    %309 = vector.extract_strided_slice %299 {offsets = [0, 32], sizes = [8, 32], strides = [1, 1]} : vector<8x96xf32> to vector<8x32xf32>
    %310 = arith.addf %308, %309 : vector<8x32xf32>
    %311 = arith.negf %310 : vector<8x32xf32>
    %312 = math.exp %311 : vector<8x32xf32>
    %cst_67 = arith.constant 1.000000e+00 : f32
    %313 = vector.broadcast %cst_67 : f32 to vector<8x32xf32>
    %314 = arith.addf %313, %312 : vector<8x32xf32>
    %315 = arith.divf %313, %314 : vector<8x32xf32>
    %316 = vector.extract_strided_slice %298 {offsets = [0, 64], sizes = [8, 32], strides = [1, 1]} : vector<8x96xf32> to vector<8x32xf32>
    %317 = vector.extract_strided_slice %299 {offsets = [0, 64], sizes = [8, 32], strides = [1, 1]} : vector<8x96xf32> to vector<8x32xf32>
    %318 = vector.broadcast %5 : vector<1x32xf32> to vector<8x32xf32>
    %319 = arith.addf %317, %318 : vector<8x32xf32>
    %320 = arith.mulf %307, %319 : vector<8x32xf32>
    %321 = arith.addf %316, %320 : vector<8x32xf32>
    %322 = math.tanh %321 : vector<8x32xf32>
    %cst_68 = arith.constant 1.000000e+00 : f32
    %323 = vector.broadcast %cst_68 : f32 to vector<8x32xf32>
    %324 = arith.subf %323, %315 : vector<8x32xf32>
    %325 = arith.mulf %324, %322 : vector<8x32xf32>
    %326 = arith.mulf %315, %263 : vector<8x32xf32>
    %327 = arith.addf %325, %326 : vector<8x32xf32>
    %c5_i32 = arith.constant 5 : i32
    %328 = arith.index_cast %c5_i32 : i32 to index
    %c0_69 = arith.constant 0 : index
    %c0_70 = arith.constant 0 : index
    %329 = vector.load %arg1[%328, %c0_69, %c0_70] : memref<8x8x96xf32, #tpu.memory_space<vmem>>, vector<1x8x96xf32>
    %330 = vector.shape_cast %329 : vector<1x8x96xf32> to vector<8x96xf32>
    %cst_71 = arith.constant dense<0.000000e+00> : vector<8x96xf32>
    %331 = tpu.matmul %295, %0, %cst_71 {dimension_numbers = #tpu.dot_dimension_numbers<[1], [0], [0], [1], [0, 0, 1, 1], [], []>} : vector<8x32xf32>, vector<32x96xf32>, vector<8x96xf32> -> vector<8x96xf32>
    %332 = vector.extract_strided_slice %330 {offsets = [0, 0], sizes = [8, 32], strides = [1, 1]} : vector<8x96xf32> to vector<8x32xf32>
    %333 = vector.extract_strided_slice %331 {offsets = [0, 0], sizes = [8, 32], strides = [1, 1]} : vector<8x96xf32> to vector<8x32xf32>
    %334 = arith.addf %332, %333 : vector<8x32xf32>
    %335 = arith.negf %334 : vector<8x32xf32>
    %336 = math.exp %335 : vector<8x32xf32>
    %cst_72 = arith.constant 1.000000e+00 : f32
    %337 = vector.broadcast %cst_72 : f32 to vector<8x32xf32>
    %338 = arith.addf %337, %336 : vector<8x32xf32>
    %339 = arith.divf %337, %338 : vector<8x32xf32>
    %340 = vector.extract_strided_slice %330 {offsets = [0, 32], sizes = [8, 32], strides = [1, 1]} : vector<8x96xf32> to vector<8x32xf32>
    %341 = vector.extract_strided_slice %331 {offsets = [0, 32], sizes = [8, 32], strides = [1, 1]} : vector<8x96xf32> to vector<8x32xf32>
    %342 = arith.addf %340, %341 : vector<8x32xf32>
    %343 = arith.negf %342 : vector<8x32xf32>
    %344 = math.exp %343 : vector<8x32xf32>
    %cst_73 = arith.constant 1.000000e+00 : f32
    %345 = vector.broadcast %cst_73 : f32 to vector<8x32xf32>
    %346 = arith.addf %345, %344 : vector<8x32xf32>
    %347 = arith.divf %345, %346 : vector<8x32xf32>
    %348 = vector.extract_strided_slice %330 {offsets = [0, 64], sizes = [8, 32], strides = [1, 1]} : vector<8x96xf32> to vector<8x32xf32>
    %349 = vector.extract_strided_slice %331 {offsets = [0, 64], sizes = [8, 32], strides = [1, 1]} : vector<8x96xf32> to vector<8x32xf32>
    %350 = vector.broadcast %1 : vector<1x32xf32> to vector<8x32xf32>
    %351 = arith.addf %349, %350 : vector<8x32xf32>
    %352 = arith.mulf %339, %351 : vector<8x32xf32>
    %353 = arith.addf %348, %352 : vector<8x32xf32>
    %354 = math.tanh %353 : vector<8x32xf32>
    %cst_74 = arith.constant 1.000000e+00 : f32
    %355 = vector.broadcast %cst_74 : f32 to vector<8x32xf32>
    %356 = arith.subf %355, %347 : vector<8x32xf32>
    %357 = arith.mulf %356, %354 : vector<8x32xf32>
    %358 = arith.mulf %347, %295 : vector<8x32xf32>
    %359 = arith.addf %357, %358 : vector<8x32xf32>
    %cst_75 = arith.constant dense<0.000000e+00> : vector<8x96xf32>
    %360 = tpu.matmul %359, %2, %cst_75 {dimension_numbers = #tpu.dot_dimension_numbers<[1], [0], [0], [1], [0, 0, 1, 1], [], []>} : vector<8x32xf32>, vector<32x96xf32>, vector<8x96xf32> -> vector<8x96xf32>
    %361 = vector.broadcast %3 : vector<1x96xf32> to vector<8x96xf32>
    %362 = arith.addf %360, %361 : vector<8x96xf32>
    %cst_76 = arith.constant dense<0.000000e+00> : vector<8x96xf32>
    %363 = tpu.matmul %327, %4, %cst_76 {dimension_numbers = #tpu.dot_dimension_numbers<[1], [0], [0], [1], [0, 0, 1, 1], [], []>} : vector<8x32xf32>, vector<32x96xf32>, vector<8x96xf32> -> vector<8x96xf32>
    %364 = vector.extract_strided_slice %362 {offsets = [0, 0], sizes = [8, 32], strides = [1, 1]} : vector<8x96xf32> to vector<8x32xf32>
    %365 = vector.extract_strided_slice %363 {offsets = [0, 0], sizes = [8, 32], strides = [1, 1]} : vector<8x96xf32> to vector<8x32xf32>
    %366 = arith.addf %364, %365 : vector<8x32xf32>
    %367 = arith.negf %366 : vector<8x32xf32>
    %368 = math.exp %367 : vector<8x32xf32>
    %cst_77 = arith.constant 1.000000e+00 : f32
    %369 = vector.broadcast %cst_77 : f32 to vector<8x32xf32>
    %370 = arith.addf %369, %368 : vector<8x32xf32>
    %371 = arith.divf %369, %370 : vector<8x32xf32>
    %372 = vector.extract_strided_slice %362 {offsets = [0, 32], sizes = [8, 32], strides = [1, 1]} : vector<8x96xf32> to vector<8x32xf32>
    %373 = vector.extract_strided_slice %363 {offsets = [0, 32], sizes = [8, 32], strides = [1, 1]} : vector<8x96xf32> to vector<8x32xf32>
    %374 = arith.addf %372, %373 : vector<8x32xf32>
    %375 = arith.negf %374 : vector<8x32xf32>
    %376 = math.exp %375 : vector<8x32xf32>
    %cst_78 = arith.constant 1.000000e+00 : f32
    %377 = vector.broadcast %cst_78 : f32 to vector<8x32xf32>
    %378 = arith.addf %377, %376 : vector<8x32xf32>
    %379 = arith.divf %377, %378 : vector<8x32xf32>
    %380 = vector.extract_strided_slice %362 {offsets = [0, 64], sizes = [8, 32], strides = [1, 1]} : vector<8x96xf32> to vector<8x32xf32>
    %381 = vector.extract_strided_slice %363 {offsets = [0, 64], sizes = [8, 32], strides = [1, 1]} : vector<8x96xf32> to vector<8x32xf32>
    %382 = vector.broadcast %5 : vector<1x32xf32> to vector<8x32xf32>
    %383 = arith.addf %381, %382 : vector<8x32xf32>
    %384 = arith.mulf %371, %383 : vector<8x32xf32>
    %385 = arith.addf %380, %384 : vector<8x32xf32>
    %386 = math.tanh %385 : vector<8x32xf32>
    %cst_79 = arith.constant 1.000000e+00 : f32
    %387 = vector.broadcast %cst_79 : f32 to vector<8x32xf32>
    %388 = arith.subf %387, %379 : vector<8x32xf32>
    %389 = arith.mulf %388, %386 : vector<8x32xf32>
    %390 = arith.mulf %379, %327 : vector<8x32xf32>
    %391 = arith.addf %389, %390 : vector<8x32xf32>
    %c6_i32 = arith.constant 6 : i32
    %392 = arith.index_cast %c6_i32 : i32 to index
    %c0_80 = arith.constant 0 : index
    %c0_81 = arith.constant 0 : index
    %393 = vector.load %arg1[%392, %c0_80, %c0_81] : memref<8x8x96xf32, #tpu.memory_space<vmem>>, vector<1x8x96xf32>
    %394 = vector.shape_cast %393 : vector<1x8x96xf32> to vector<8x96xf32>
    %cst_82 = arith.constant dense<0.000000e+00> : vector<8x96xf32>
    %395 = tpu.matmul %359, %0, %cst_82 {dimension_numbers = #tpu.dot_dimension_numbers<[1], [0], [0], [1], [0, 0, 1, 1], [], []>} : vector<8x32xf32>, vector<32x96xf32>, vector<8x96xf32> -> vector<8x96xf32>
    %396 = vector.extract_strided_slice %394 {offsets = [0, 0], sizes = [8, 32], strides = [1, 1]} : vector<8x96xf32> to vector<8x32xf32>
    %397 = vector.extract_strided_slice %395 {offsets = [0, 0], sizes = [8, 32], strides = [1, 1]} : vector<8x96xf32> to vector<8x32xf32>
    %398 = arith.addf %396, %397 : vector<8x32xf32>
    %399 = arith.negf %398 : vector<8x32xf32>
    %400 = math.exp %399 : vector<8x32xf32>
    %cst_83 = arith.constant 1.000000e+00 : f32
    %401 = vector.broadcast %cst_83 : f32 to vector<8x32xf32>
    %402 = arith.addf %401, %400 : vector<8x32xf32>
    %403 = arith.divf %401, %402 : vector<8x32xf32>
    %404 = vector.extract_strided_slice %394 {offsets = [0, 32], sizes = [8, 32], strides = [1, 1]} : vector<8x96xf32> to vector<8x32xf32>
    %405 = vector.extract_strided_slice %395 {offsets = [0, 32], sizes = [8, 32], strides = [1, 1]} : vector<8x96xf32> to vector<8x32xf32>
    %406 = arith.addf %404, %405 : vector<8x32xf32>
    %407 = arith.negf %406 : vector<8x32xf32>
    %408 = math.exp %407 : vector<8x32xf32>
    %cst_84 = arith.constant 1.000000e+00 : f32
    %409 = vector.broadcast %cst_84 : f32 to vector<8x32xf32>
    %410 = arith.addf %409, %408 : vector<8x32xf32>
    %411 = arith.divf %409, %410 : vector<8x32xf32>
    %412 = vector.extract_strided_slice %394 {offsets = [0, 64], sizes = [8, 32], strides = [1, 1]} : vector<8x96xf32> to vector<8x32xf32>
    %413 = vector.extract_strided_slice %395 {offsets = [0, 64], sizes = [8, 32], strides = [1, 1]} : vector<8x96xf32> to vector<8x32xf32>
    %414 = vector.broadcast %1 : vector<1x32xf32> to vector<8x32xf32>
    %415 = arith.addf %413, %414 : vector<8x32xf32>
    %416 = arith.mulf %403, %415 : vector<8x32xf32>
    %417 = arith.addf %412, %416 : vector<8x32xf32>
    %418 = math.tanh %417 : vector<8x32xf32>
    %cst_85 = arith.constant 1.000000e+00 : f32
    %419 = vector.broadcast %cst_85 : f32 to vector<8x32xf32>
    %420 = arith.subf %419, %411 : vector<8x32xf32>
    %421 = arith.mulf %420, %418 : vector<8x32xf32>
    %422 = arith.mulf %411, %359 : vector<8x32xf32>
    %423 = arith.addf %421, %422 : vector<8x32xf32>
    %cst_86 = arith.constant dense<0.000000e+00> : vector<8x96xf32>
    %424 = tpu.matmul %423, %2, %cst_86 {dimension_numbers = #tpu.dot_dimension_numbers<[1], [0], [0], [1], [0, 0, 1, 1], [], []>} : vector<8x32xf32>, vector<32x96xf32>, vector<8x96xf32> -> vector<8x96xf32>
    %425 = vector.broadcast %3 : vector<1x96xf32> to vector<8x96xf32>
    %426 = arith.addf %424, %425 : vector<8x96xf32>
    %cst_87 = arith.constant dense<0.000000e+00> : vector<8x96xf32>
    %427 = tpu.matmul %391, %4, %cst_87 {dimension_numbers = #tpu.dot_dimension_numbers<[1], [0], [0], [1], [0, 0, 1, 1], [], []>} : vector<8x32xf32>, vector<32x96xf32>, vector<8x96xf32> -> vector<8x96xf32>
    %428 = vector.extract_strided_slice %426 {offsets = [0, 0], sizes = [8, 32], strides = [1, 1]} : vector<8x96xf32> to vector<8x32xf32>
    %429 = vector.extract_strided_slice %427 {offsets = [0, 0], sizes = [8, 32], strides = [1, 1]} : vector<8x96xf32> to vector<8x32xf32>
    %430 = arith.addf %428, %429 : vector<8x32xf32>
    %431 = arith.negf %430 : vector<8x32xf32>
    %432 = math.exp %431 : vector<8x32xf32>
    %cst_88 = arith.constant 1.000000e+00 : f32
    %433 = vector.broadcast %cst_88 : f32 to vector<8x32xf32>
    %434 = arith.addf %433, %432 : vector<8x32xf32>
    %435 = arith.divf %433, %434 : vector<8x32xf32>
    %436 = vector.extract_strided_slice %426 {offsets = [0, 32], sizes = [8, 32], strides = [1, 1]} : vector<8x96xf32> to vector<8x32xf32>
    %437 = vector.extract_strided_slice %427 {offsets = [0, 32], sizes = [8, 32], strides = [1, 1]} : vector<8x96xf32> to vector<8x32xf32>
    %438 = arith.addf %436, %437 : vector<8x32xf32>
    %439 = arith.negf %438 : vector<8x32xf32>
    %440 = math.exp %439 : vector<8x32xf32>
    %cst_89 = arith.constant 1.000000e+00 : f32
    %441 = vector.broadcast %cst_89 : f32 to vector<8x32xf32>
    %442 = arith.addf %441, %440 : vector<8x32xf32>
    %443 = arith.divf %441, %442 : vector<8x32xf32>
    %444 = vector.extract_strided_slice %426 {offsets = [0, 64], sizes = [8, 32], strides = [1, 1]} : vector<8x96xf32> to vector<8x32xf32>
    %445 = vector.extract_strided_slice %427 {offsets = [0, 64], sizes = [8, 32], strides = [1, 1]} : vector<8x96xf32> to vector<8x32xf32>
    %446 = vector.broadcast %5 : vector<1x32xf32> to vector<8x32xf32>
    %447 = arith.addf %445, %446 : vector<8x32xf32>
    %448 = arith.mulf %435, %447 : vector<8x32xf32>
    %449 = arith.addf %444, %448 : vector<8x32xf32>
    %450 = math.tanh %449 : vector<8x32xf32>
    %cst_90 = arith.constant 1.000000e+00 : f32
    %451 = vector.broadcast %cst_90 : f32 to vector<8x32xf32>
    %452 = arith.subf %451, %443 : vector<8x32xf32>
    %453 = arith.mulf %452, %450 : vector<8x32xf32>
    %454 = arith.mulf %443, %391 : vector<8x32xf32>
    %455 = arith.addf %453, %454 : vector<8x32xf32>
    %c7_i32 = arith.constant 7 : i32
    %456 = arith.index_cast %c7_i32 : i32 to index
    %c0_91 = arith.constant 0 : index
    %c0_92 = arith.constant 0 : index
    %457 = vector.load %arg1[%456, %c0_91, %c0_92] : memref<8x8x96xf32, #tpu.memory_space<vmem>>, vector<1x8x96xf32>
    %458 = vector.shape_cast %457 : vector<1x8x96xf32> to vector<8x96xf32>
    %cst_93 = arith.constant dense<0.000000e+00> : vector<8x96xf32>
    %459 = tpu.matmul %423, %0, %cst_93 {dimension_numbers = #tpu.dot_dimension_numbers<[1], [0], [0], [1], [0, 0, 1, 1], [], []>} : vector<8x32xf32>, vector<32x96xf32>, vector<8x96xf32> -> vector<8x96xf32>
    %460 = vector.extract_strided_slice %458 {offsets = [0, 0], sizes = [8, 32], strides = [1, 1]} : vector<8x96xf32> to vector<8x32xf32>
    %461 = vector.extract_strided_slice %459 {offsets = [0, 0], sizes = [8, 32], strides = [1, 1]} : vector<8x96xf32> to vector<8x32xf32>
    %462 = arith.addf %460, %461 : vector<8x32xf32>
    %463 = arith.negf %462 : vector<8x32xf32>
    %464 = math.exp %463 : vector<8x32xf32>
    %cst_94 = arith.constant 1.000000e+00 : f32
    %465 = vector.broadcast %cst_94 : f32 to vector<8x32xf32>
    %466 = arith.addf %465, %464 : vector<8x32xf32>
    %467 = arith.divf %465, %466 : vector<8x32xf32>
    %468 = vector.extract_strided_slice %458 {offsets = [0, 32], sizes = [8, 32], strides = [1, 1]} : vector<8x96xf32> to vector<8x32xf32>
    %469 = vector.extract_strided_slice %459 {offsets = [0, 32], sizes = [8, 32], strides = [1, 1]} : vector<8x96xf32> to vector<8x32xf32>
    %470 = arith.addf %468, %469 : vector<8x32xf32>
    %471 = arith.negf %470 : vector<8x32xf32>
    %472 = math.exp %471 : vector<8x32xf32>
    %cst_95 = arith.constant 1.000000e+00 : f32
    %473 = vector.broadcast %cst_95 : f32 to vector<8x32xf32>
    %474 = arith.addf %473, %472 : vector<8x32xf32>
    %475 = arith.divf %473, %474 : vector<8x32xf32>
    %476 = vector.extract_strided_slice %458 {offsets = [0, 64], sizes = [8, 32], strides = [1, 1]} : vector<8x96xf32> to vector<8x32xf32>
    %477 = vector.extract_strided_slice %459 {offsets = [0, 64], sizes = [8, 32], strides = [1, 1]} : vector<8x96xf32> to vector<8x32xf32>
    %478 = vector.broadcast %1 : vector<1x32xf32> to vector<8x32xf32>
    %479 = arith.addf %477, %478 : vector<8x32xf32>
    %480 = arith.mulf %467, %479 : vector<8x32xf32>
    %481 = arith.addf %476, %480 : vector<8x32xf32>
    %482 = math.tanh %481 : vector<8x32xf32>
    %cst_96 = arith.constant 1.000000e+00 : f32
    %483 = vector.broadcast %cst_96 : f32 to vector<8x32xf32>
    %484 = arith.subf %483, %475 : vector<8x32xf32>
    %485 = arith.mulf %484, %482 : vector<8x32xf32>
    %486 = arith.mulf %475, %423 : vector<8x32xf32>
    %487 = arith.addf %485, %486 : vector<8x32xf32>
    %cst_97 = arith.constant dense<0.000000e+00> : vector<8x96xf32>
    %488 = tpu.matmul %487, %2, %cst_97 {dimension_numbers = #tpu.dot_dimension_numbers<[1], [0], [0], [1], [0, 0, 1, 1], [], []>} : vector<8x32xf32>, vector<32x96xf32>, vector<8x96xf32> -> vector<8x96xf32>
    %489 = vector.broadcast %3 : vector<1x96xf32> to vector<8x96xf32>
    %490 = arith.addf %488, %489 : vector<8x96xf32>
    %cst_98 = arith.constant dense<0.000000e+00> : vector<8x96xf32>
    %491 = tpu.matmul %455, %4, %cst_98 {dimension_numbers = #tpu.dot_dimension_numbers<[1], [0], [0], [1], [0, 0, 1, 1], [], []>} : vector<8x32xf32>, vector<32x96xf32>, vector<8x96xf32> -> vector<8x96xf32>
    %492 = vector.extract_strided_slice %490 {offsets = [0, 0], sizes = [8, 32], strides = [1, 1]} : vector<8x96xf32> to vector<8x32xf32>
    %493 = vector.extract_strided_slice %491 {offsets = [0, 0], sizes = [8, 32], strides = [1, 1]} : vector<8x96xf32> to vector<8x32xf32>
    %494 = arith.addf %492, %493 : vector<8x32xf32>
    %495 = arith.negf %494 : vector<8x32xf32>
    %496 = math.exp %495 : vector<8x32xf32>
    %cst_99 = arith.constant 1.000000e+00 : f32
    %497 = vector.broadcast %cst_99 : f32 to vector<8x32xf32>
    %498 = arith.addf %497, %496 : vector<8x32xf32>
    %499 = arith.divf %497, %498 : vector<8x32xf32>
    %500 = vector.extract_strided_slice %490 {offsets = [0, 32], sizes = [8, 32], strides = [1, 1]} : vector<8x96xf32> to vector<8x32xf32>
    %501 = vector.extract_strided_slice %491 {offsets = [0, 32], sizes = [8, 32], strides = [1, 1]} : vector<8x96xf32> to vector<8x32xf32>
    %502 = arith.addf %500, %501 : vector<8x32xf32>
    %503 = arith.negf %502 : vector<8x32xf32>
    %504 = math.exp %503 : vector<8x32xf32>
    %cst_100 = arith.constant 1.000000e+00 : f32
    %505 = vector.broadcast %cst_100 : f32 to vector<8x32xf32>
    %506 = arith.addf %505, %504 : vector<8x32xf32>
    %507 = arith.divf %505, %506 : vector<8x32xf32>
    %508 = vector.extract_strided_slice %490 {offsets = [0, 64], sizes = [8, 32], strides = [1, 1]} : vector<8x96xf32> to vector<8x32xf32>
    %509 = vector.extract_strided_slice %491 {offsets = [0, 64], sizes = [8, 32], strides = [1, 1]} : vector<8x96xf32> to vector<8x32xf32>
    %510 = vector.broadcast %5 : vector<1x32xf32> to vector<8x32xf32>
    %511 = arith.addf %509, %510 : vector<8x32xf32>
    %512 = arith.mulf %499, %511 : vector<8x32xf32>
    %513 = arith.addf %508, %512 : vector<8x32xf32>
    %514 = math.tanh %513 : vector<8x32xf32>
    %cst_101 = arith.constant 1.000000e+00 : f32
    %515 = vector.broadcast %cst_101 : f32 to vector<8x32xf32>
    %516 = arith.subf %515, %507 : vector<8x32xf32>
    %517 = arith.mulf %516, %514 : vector<8x32xf32>
    %518 = arith.mulf %507, %455 : vector<8x32xf32>
    %519 = arith.addf %517, %518 : vector<8x32xf32>
    %c8_i32 = arith.constant 8 : i32
    %c0_102 = arith.constant 0 : index
    %c0_103 = arith.constant 0 : index
    %520 = vector.load %arg10[%c0_102, %c0_103] : memref<32x1xf32, #tpu.memory_space<vmem>>, vector<32x1xf32>
    %cst_104 = arith.constant dense<0.000000e+00> : vector<8x1xf32>
    %521 = tpu.matmul %519, %520, %cst_104 {dimension_numbers = #tpu.dot_dimension_numbers<[1], [0], [0], [1], [0, 0, 1, 1], [], []>} : vector<8x32xf32>, vector<32x1xf32>, vector<8x1xf32> -> vector<8x1xf32>
    %c0_105 = arith.constant 0 : index
    %c0_106 = arith.constant 0 : index
    %522 = vector.load %arg11[%c0_105, %c0_106] : memref<1x1xf32, #tpu.memory_space<vmem>>, vector<1x1xf32>
    %523 = vector.broadcast %522 : vector<1x1xf32> to vector<8x1xf32>
    %524 = arith.addf %521, %523 : vector<8x1xf32>
    %c0_107 = arith.constant 0 : index
    %c0_108 = arith.constant 0 : index
    %525 = vector.load %arg12[%c0_107, %c0_108] : memref<8x1xf32, #tpu.memory_space<vmem>>, vector<8x1xf32>
    tpu.vector_store %arg12[%c0_107, %c0_108], %524 {strides = array<i32>} : memref<8x1xf32, #tpu.memory_space<vmem>>, vector<8x1xf32>,
    return
  }
  func.func @transform_0(%arg0: i32) -> (i32, i32, i32) {
    %c0_i32 = arith.constant 0 : i32
    %c0_i32_0 = arith.constant 0 : i32
    %c0_i32_1 = arith.constant 0 : i32
    return %c0_i32, %arg0, %c0_i32_0 : i32, i32, i32
  }
  func.func @transform_1(%arg0: i32) -> (i32, i32) {
    %c0_i32 = arith.constant 0 : i32
    %c0_i32_0 = arith.constant 0 : i32
    return %arg0, %c0_i32 : i32, i32
  }
  func.func @transform_2(%arg0: i32) -> (i32, i32) {
    %c0_i32 = arith.constant 0 : i32
    %c0_i32_0 = arith.constant 0 : i32
    return %arg0, %c0_i32 : i32, i32
  }
  func.func @transform_3(%arg0: i32) -> (i32, i32) {
    %c0_i32 = arith.constant 0 : i32
    %c0_i32_0 = arith.constant 0 : i32
    %c0_i32_1 = arith.constant 0 : i32
    return %c0_i32, %c0_i32_0 : i32, i32
  }
  func.func @transform_4(%arg0: i32) -> (i32, i32) {
    %c0_i32 = arith.constant 0 : i32
    %c0_i32_0 = arith.constant 0 : i32
    %c0_i32_1 = arith.constant 0 : i32
    return %c0_i32, %c0_i32_0 : i32, i32
  }
  func.func @transform_5(%arg0: i32) -> (i32, i32) {
    %c0_i32 = arith.constant 0 : i32
    %c0_i32_0 = arith.constant 0 : i32
    %c0_i32_1 = arith.constant 0 : i32
    return %c0_i32, %c0_i32_0 : i32, i32
  }
  func.func @transform_6(%arg0: i32) -> (i32, i32) {
    %c0_i32 = arith.constant 0 : i32
    %c0_i32_0 = arith.constant 0 : i32
    %c0_i32_1 = arith.constant 0 : i32
    return %c0_i32, %c0_i32_0 : i32, i32
  }
  func.func @transform_7(%arg0: i32) -> (i32, i32) {
    %c0_i32 = arith.constant 0 : i32
    %c0_i32_0 = arith.constant 0 : i32
    %c0_i32_1 = arith.constant 0 : i32
    return %c0_i32, %c0_i32_0 : i32, i32
  }
  func.func @transform_8(%arg0: i32) -> (i32, i32) {
    %c0_i32 = arith.constant 0 : i32
    %c0_i32_0 = arith.constant 0 : i32
    %c0_i32_1 = arith.constant 0 : i32
    return %c0_i32, %c0_i32_0 : i32, i32
  }
  func.func @transform_9(%arg0: i32) -> (i32, i32) {
    %c0_i32 = arith.constant 0 : i32
    %c0_i32_0 = arith.constant 0 : i32
    %c0_i32_1 = arith.constant 0 : i32
    return %c0_i32, %c0_i32_0 : i32, i32
  }
  func.func @transform_10(%arg0: i32) -> (i32, i32) {
    %c0_i32 = arith.constant 0 : i32
    %c0_i32_0 = arith.constant 0 : i32
    %c0_i32_1 = arith.constant 0 : i32
    return %c0_i32, %c0_i32_0 : i32, i32
  }
  func.func @transform_11(%arg0: i32) -> (i32, i32) {
    %c0_i32 = arith.constant 0 : i32
    %c0_i32_0 = arith.constant 0 : i32
    return %arg0, %c0_i32 : i32, i32
  }
}

</mosaic_0001>

<bundles_post_ra>
// kernel: tpu_custom_call.1
= control target key start
LH: loop header
LB: loop body
LE: loop exit
PB: predicated region body
PF: predicated region fallthrough
CT: control target
= control target key end

     0   :  { %s3704_s0 = inlined_call_operand.hbm [shape: f32[8,8,96], index: 0, kind: input, shape index: {}]   ;;  %s3705_s1 = inlined_call_operand.vmem [shape: f32[8,32], index: 1, kind: input, shape index: {}]   ;;  %s3706_s2 = inlined_call_operand.vmem [shape: f32[8,32], index: 2, kind: input, shape index: {}]   ;;  %s3707_s3 = inlined_call_operand.vmem [shape: f32[32,96], index: 3, kind: input, shape index: {}]   ;;  %s3708_s4 = inlined_call_operand.vmem [shape: f32[1,32], index: 4, kind: input, shape index: {}]   ;;  %s3709_s5 = inlined_call_operand.hbm [shape: f32[32,96], index: 5, kind: input, shape index: {}]   ;;  %s3710_s6 = inlined_call_operand.vmem [shape: f32[1,96], index: 6, kind: input, shape index: {}]   ;;  %s3711_s7 = inlined_call_operand.hbm [shape: f32[32,96], index: 7, kind: input, shape index: {}]   ;;  %s3712_s8 = inlined_call_operand.vmem [shape: f32[1,32], index: 8, kind: input, shape index: {}]   ;;  %s3713_s9 = inlined_call_operand.vmem [shape: f32[32,1], index: 9, kind: input, shape index: {}]   ;;  %s3714_s10 = inlined_call_operand.<no memory space> [shape: f32[1,1], index: 10, kind: input, shape index: {}]   ;;  %s3715_s11 = inlined_call_operand.vmem [shape: f32[8,1], index: 11, kind: output, shape index: {}]  }
   0x1   :  { %v16_v0 = vstv %s3714_s10 }
   0x2   :  { %17 = vst [vmem:[#allocation2] sm:$0x1] %v16_v0 }
   0x3   :  { %18 = vsyncpa [#allocation4], 0 }
   0x4   :  { %19 = vsyncpa [#allocation6], 0  ;;  %s3201_s19 = smov [#allocation5]   ;;  %s3202_s21 = smov [#allocation3]  }
   0x5   :  { %s45_s20 = sshll.u32 %s3201_s19, 4  ;;  %s25_s22 = sshll.u32 %s3202_s21, 4  ;;  %s46_s20 = int_to_ptr.vmem [resolvable:$true] %s45_s20  ;;  %s3275_s22 = int_to_ptr.vmem [resolvable:$true] %s25_s22 }
   0x6   :  { %s3131_s25 = scalar_lea.hbm %s3709_s5, 512 }
   0x7   :  { %p3132_p0 = scmp.ne.s32.totalorder %s3709_s5, %s3131_s25  ;;  %p3135_p1 = scmp.lt.u32.totalorder %s3131_s25, %s3709_s5 }
   0x9   :  { %p3137_p2 = pnand %p3135_p1, %p3132_p0 }
   0xb   :  { %3140 = shalt.err (!%p3137_p2)
}
   0xc   :  { %s3141_s29 = scalar_lea.vmem %s46_s20, 512  ;;  %p3146_p4 = scmp.lt.s32.totalorder %s46_s20, %s46_s20 }
   0xd   :  { %p3142_p3 = scmp.ne.s32.totalorder %s46_s20, %s3141_s29  ;;  %p3147_p5 = scmp.lt.s32.totalorder %s3141_s29, %s3141_s29 }
   0xf   :  { %p3148_p6 = por %p3147_p5, %p3146_p4 }
  0x11   :  { %p3149_p7 = pnand %p3148_p6, %p3142_p3 }
  0x13   :  { %3152 = shalt.err (!%p3149_p7)
}
  0x14   :  { %s3203_s30 = smov 128   ;;  %s3204_s12 = smov 8  }
  0x15   :  { %51 = dma.hbm_to_vmem [thread:$0]  %s3709_s5, 512, %s46_s20, [#allocation6], %s3203_s30, %s3203_s30, %s3204_s12  }
  0x16   :  { %s3153_s17 = scalar_lea.hbm %s3704_s0, 1024 }
  0x17   :  { %p3154_p8 = scmp.ne.s32.totalorder %s3704_s0, %s3153_s17  ;;  %p3157_p9 = scmp.lt.u32.totalorder %s3153_s17, %s3704_s0 }
  0x19   :  { %p3159_p10 = pnand %p3157_p9, %p3154_p8 }
  0x1b   :  { %3162 = shalt.err (!%p3159_p10)
}
  0x1c   :  { %s3163_s24 = scalar_lea.vmem %s3275_s22, 1024  ;;  %p3168_p12 = scmp.lt.s32.totalorder %s3275_s22, %s3275_s22 }
  0x1d   :  { %p3164_p11 = scmp.ne.s32.totalorder %s3275_s22, %s3163_s24  ;;  %p3169_p13 = scmp.lt.s32.totalorder %s3163_s24, %s3163_s24 }
  0x1f   :  { %p3170_p0 = por %p3169_p13, %p3168_p12 }
  0x21   :  { %p3171_p1 = pnand %p3170_p0, %p3164_p11 }
  0x23   :  { %3174 = shalt.err (!%p3171_p1)
}
  0x24   :  { %31 = dma.hbm_to_vmem [thread:$0]  %s3704_s0, 1024, %s3275_s22, [#allocation4], %s3203_s30, %s3203_s30, %s3204_s12  }
  0x25   :  { %s3205_s25 = smov [#allocation7]   ;;  %s3175_s10 = scalar_lea.hbm %s3711_s7, 512 }
  0x26   :  { %s59_s26 = sshll.u32 %s3205_s25, 4  ;;  %p3176_p2 = scmp.ne.s32.totalorder %s3711_s7, %s3175_s10  ;;  %s60_s26 = int_to_ptr.vmem [resolvable:$true] %s59_s26 }
  0x27   :  { %p3179_p3 = scmp.lt.u32.totalorder %s3175_s10, %s3711_s7 }
  0x29   :  { %p3181_p4 = pnand %p3179_p3, %p3176_p2 }
  0x2b   :  { %3184 = shalt.err (!%p3181_p4)
}
  0x2c   :  { %s3185_s16 = scalar_lea.vmem %s60_s26, 512  ;;  %p3190_p6 = scmp.lt.s32.totalorder %s60_s26, %s60_s26 }
  0x2d   :  { %p3186_p5 = scmp.ne.s32.totalorder %s60_s26, %s3185_s16  ;;  %p3191_p7 = scmp.lt.s32.totalorder %s3185_s16, %s3185_s16 }
  0x2f   :  { %p3192_p8 = por %p3191_p7, %p3190_p6 }
  0x31   :  { %p3193_p9 = pnand %p3192_p8, %p3186_p5 }
  0x33   :  { %3196 = shalt.err (!%p3193_p9)
}
  0x34   :  { %65 = dma.hbm_to_vmem [thread:$0]  %s3711_s7, 512, %s60_s26, [#allocation6], %s3203_s30, %s3203_s30, %s3204_s12  }
  0x35   :  { %3197 = dma.done.wait [#allocation4], 1024  }
  0x36   :  { %3198 = vsyncadd [#allocation4], 4294966272 }
  0x37   :  { %3199 = dma.done.wait [#allocation6], 1024  }
  0x38   :  { %3200 = vsyncadd [#allocation6], 4294966272  ;;  %v3206_v1 = vmov 0.0|0.0   ;;  %vm3207_vm0 = vmmov 0   ;;  %v3208_v2 = vmov 0.0   ;;  %v81_v3 = vld [vmem:[%s3707_s3] sm:$0xff] }
  0x39   :  { %2874 = vmatprep.subr.bf16.mxu0 %v3206_v1  ;;  %2607 = vmatprep.mubr.msk.f32.mxu0 %vm3207_vm0, %v3208_v2  ;;  %v82_v4 = vld [vmem:[%s3707_s3 + $0x8] sm:$0xff]  ;;  %v83_v5 = vld [vmem:[%s3707_s3 + $0x10] sm:$0xff]  ;;  %v84_v7 = vld [vmem:[%s3707_s3 + $0x18] sm:$0xff]  ;;  %s3209_s20 = smov 64   ;;  %vm99_vm1 = vcmask 261120   ;;  %s3210_s3 = smov 32  }
  0x3a   :  { %2880 = vmatprep.subr.bf16.mxu1 %v3206_v1  ;;  %2618 = vmatprep.mubr.msk.f32.mxu1 %vm3207_vm0, %v3208_v2  ;;  %v3342_v6 = vpack.c.bf16 %v82_v4, %v81_v3  ;;  %v2431_v8 = vld [vmem:[%s3708_s4] ss:$0 sm:$0xff]  ;;  %v3352_v9 = vpack.c.bf16 %v84_v7, %v83_v5  ;;  %v98_v15 = vld [vmem:[#allocation3] sm:$0xff]  ;;  %v92_v26 = vld [vmem:[#allocation7 + $0x8] sm:$0xff]  ;;  %s3211_s27 = smov 96   ;;  %vm2421_vm2 = vcmask 7168  }
  0x3b   :  { %185 = vrot.lane.b32.xlu0 %v2431_v8, %s3209_s20  ;;  %v96_v10 = vld [vmem:[%s3705_s1] sm:$0xff]  ;;  %v93_v27 = vld [vmem:[#allocation7 + $0x10] sm:$0xff]  ;;  %v87_v31 = vld [vmem:[#allocation5 + $0x8] sm:$0xff] }
  0x3c   :  { %2876 = vmatpush3.bf16.msra.mxu0 %v3342_v6  ;;  %v91_v25 = vld [vmem:[#allocation7] sm:$0xff]  ;;  %v94_v29 = vld [vmem:[#allocation7 + $0x18] sm:$0xff]  ;;  %v88_v32 = vld [vmem:[#allocation5 + $0x10] sm:$0xff] }
  0x3d   :  { %2877 = vmatprep.subr.bf16.mxu0 %v3206_v1  ;;  %v3369_v28 = vpack.c.bf16 %v92_v26, %v91_v25  ;;  %v86_v30 = vld [vmem:[#allocation5] sm:$0xff]  ;;  %v89_v33 = vld [vmem:[#allocation5 + $0x18] sm:$0xff]  ;;  %v3372_v34 = vpack.c.bf16 %v94_v29, %v93_v27  ;;  %v404_v3 = vld [vmem:[#allocation3 + $0x8] sm:$0xff] }
  0x3e   :  { %v3374_v35 = vpack.c.bf16 %v87_v31, %v86_v30  ;;  %v3378_v36 = vpack.c.bf16 %v89_v33, %v88_v32  ;;  %v3385_v37 = vld [vmem:[%s3706_s2] sm:$0xff] }
  0x3f   :  { %v2436_v42 = vld [vmem:[%s3712_s8] ss:$0 sm:$0xff] }
  0x40   :  { %2879 = vmatpush3.bf16.msra.mxu0 %v3352_v9  ;;  %2882 = vmatpush3.bf16.msra.mxu1 %v3374_v35  ;;  %v3425_v51 = vld [vmem:[%s3710_s6] ss:$0 sm:$0xff] }
  0x41   :  { %2886 = vmatprep.subr.bf16.mxu0 %v3206_v1  ;;  %2883 = vmatprep.subr.bf16.mxu1 %v3206_v1 }
  0x43   :  { %2608 = vmatmul.mubr.msk.f32.vlgmr.msra.gmra.mrb[0].mxu0 %vm99_vm1, %v96_v10 }
  0x44   :  { %2629 = vmatprep.mubr.msk.f32.mxu0 %vm3207_vm0, %v3208_v2  ;;  %2888 = vmatpush3.bf16.msra.mxu0 %v3369_v28 }
  0x45   :  { %2889 = vmatprep.subr.bf16.mxu0 %v3206_v1  ;;  %2885 = vmatpush3.bf16.msra.mxu1 %v3378_v36 }
  0x46   :  { %2892 = vmatprep.subr.bf16.mxu1 %v3206_v1 }
  0x48   :  { %2891 = vmatpush3.bf16.msra.mxu0 %v3372_v34 }
  0x49   :  { %2898 = vmatprep.subr.bf16.mxu0 %v3206_v1 }
  0x4b   :  { %2630 = vmatmul.mubr.msk.f32.vlgmr.msra.gmra.mrb[2].mxu0 %vm99_vm1, %v3385_v37 }
  0x4c   :  { %2900 = vmatpush3.bf16.msra.mxu0 %v3374_v35  ;;  %2651 = vmatprep.mubr.msk.f32.mxu0 %vm3207_vm0, %v3208_v2 }
  0x4d   :  { %2901 = vmatprep.subr.bf16.mxu0 %v3206_v1 }
  0x50   :  { %2903 = vmatpush3.bf16.msra.mxu0 %v3378_v36 }
  0x51   :  { %2910 = vmatprep.subr.bf16.mxu0 %v3206_v1 }
  0xad   :  { %v3363_v11 = vpop.permute.xlu0 %185 }
 0x116   :  { %v169_v12 = vpop.f32.mrb[0].mxu0 }
 0x117   :  { %v188_v13 = vadd.f32 %v3363_v11, %v169_v12  ;;  %v2609_v14 = vpop.f32.mrb[1].mxu0  ;;  %v173_v16 = vadd.f32 %v169_v12, %v98_v15 }
 0x119   :  { %190 = vrot.lane.b32.xlu0 %v188_v13, %s3209_s20  ;;  %v2430_v17 = vmul.f32 -1.442695, %v173_v16 }
 0x11b   :  { %3035 = vpow2.f32 %v2430_v17 }
 0x11d   :  { %206 = vrot.lane.b32.xlu0 %v96_v10, %s3210_s3 }
 0x11e   :  { %v361_v46 = vpop.f32.mrb[2].mxu0 }
 0x11f   :  { %v2631_v47 = vpop.f32.mrb[3].mxu0 }
 0x120   :  { %v680_v47 = vld [vmem:[#allocation3 + $0x10] sm:$0xff] }
 0x121   :  { %377 = vrot.lane.b32.xlu0 %v2436_v42, %s3209_s20 }
 0x125   :  { %v3036_v18 = vpop.eup %3035 }
 0x126   :  { %v177_v19 = vadd.f32 1.0, %v3036_v18 }
 0x128   :  { %3037 = vrcp.f32 %v177_v19 }
 0x132   :  { %v3038_v20 = vpop.eup %3037 }
 0x133   :  { %v200_v40 = vsub.f32 1.0, %v3038_v20 }
 0x18b   :  { %v191_v21 = vpop.permute.xlu0 %190 }
 0x18c   :  { %v193_v22 = vmul.f32 %v3038_v20, %v191_v21 }
 0x18e   :  { %195 = vrot.lane.b32.xlu1 %v193_v22, %s3209_s20 }
 0x18f   :  { %v207_v39 = vpop.permute.xlu0 %206 }
 0x190   :  { %v209_v43 = vmul.f32 %v3038_v20, %v207_v39 }
 0x193   :  { %v3404_v48 = vpop.permute.xlu0 %377 }
 0x194   :  { %v380_v49 = vadd.f32 %v3404_v48, %v361_v46 }
 0x196   :  { %382 = vrot.lane.b32.xlu0 %v380_v49, %s3209_s20 }
 0x200   :  { %v196_v23 = vpop.permute.xlu1 %195 }
 0x201   :  { %v198_v24 = vadd.f32 %v196_v23, %v98_v15 }
 0x203   :  { %3039 = vtanh.f32 %v198_v24 }
 0x208   :  { %v383_v62 = vpop.permute.xlu0 %382 }
 0x20d   :  { %v3040_v38 = vpop.eup %3039 }
 0x20e   :  { %202 = vrot.lane.b32.xlu1 %v3040_v38, %s3211_s27 }
 0x280   :  { %v203_v41 = vpop.permute.xlu1 %202 }
 0x281   :  { %v205_v44 = vmul.f32 %v203_v41, %v200_v40 }
 0x283   :  { %v210_v45 = vadd.f32 %v209_v43, %v205_v44 }
 0x285   :  { %218 = vrot.lane.b32.xlu1 %v210_v45, %s3211_s27 }
 0x2f7   :  { %v219_v50 = vpop.permute.xlu1 %218 }
 0x2f8   :  { %2619 = vmatmul.mubr.msk.f32.vlgmr.msra.gmra.mrb[0].mxu1 %vm99_vm1, %v219_v50 }
 0x2f9   :  { %2894 = vmatpush3.bf16.msra.mxu1 %v3342_v6  ;;  %2640 = vmatprep.mubr.msk.f32.mxu1 %vm3207_vm0, %v3208_v2 }
 0x2fa   :  { %2895 = vmatprep.subr.bf16.mxu1 %v3206_v1 }
 0x2fd   :  { %2897 = vmatpush3.bf16.msra.mxu1 %v3352_v9 }
 0x2fe   :  { %2904 = vmatprep.subr.bf16.mxu1 %v3206_v1 }
 0x300   :  { %2641 = vmatmul.mubr.msk.f32.vlgmr.msra.gmra.mrb[2].mxu1 %vm99_vm1, %v219_v50 }
 0x301   :  { %2906 = vmatpush3.bf16.msra.mxu1 %v3369_v28  ;;  %2662 = vmatprep.mubr.msk.f32.mxu1 %vm3207_vm0, %v3208_v2 }
 0x302   :  { %2907 = vmatprep.subr.bf16.mxu1 %v3206_v1 }
 0x305   :  { %2909 = vmatpush3.bf16.msra.mxu1 %v3372_v34 }
 0x306   :  { %2916 = vmatprep.subr.bf16.mxu1 %v3206_v1 }
 0x3cb   :  { %v288_v52 = vpop.f32.mrb[0].mxu1 }
 0x3cc   :  { %v289_v53 = vadd.f32 %v3425_v51, %v288_v52  ;;  %v2620_v54 = vpop.f32.mrb[1].mxu1 }
 0x3ce   :  { %v365_v55 = vadd.f32 %v361_v46, %v289_v53 }
 0x3d0   :  { %v2435_v56 = vmul.f32 -1.442695, %v365_v55 }
 0x3d2   :  { %3041 = vpow2.f32 %v2435_v56 }
 0x3d3   :  { %v471_v57 = vpop.f32.mrb[2].mxu1 }
 0x3d4   :  { %v482_v58 = vadd.f32 %v471_v57, %v3363_v11  ;;  %v2642_v59 = vpop.f32.mrb[3].mxu1  ;;  %v475_v4 = vadd.f32 %v471_v57, %v404_v3 }
 0x3d6   :  { %484 = vrot.lane.b32.xlu1 %v482_v58, %s3209_s20  ;;  %v2438_v5 = vmul.f32 -1.442695, %v475_v4 }
 0x3dc   :  { %v3042_v60 = vpop.eup %3041 }
 0x3dd   :  { %v369_v61 = vadd.f32 1.0, %v3042_v60 }
 0x3df   :  { %3043 = vrcp.f32 %v369_v61 }
 0x3e0   :  { %3045 = vpow2.f32 %v2438_v5 }
 0x3e9   :  { %v3044_v63 = vpop.eup %3043 }
 0x3ea   :  { %v385_v0 = vmul.f32 %v3044_v63, %v383_v62  ;;  %v3046_v7 = vpop.eup %3045  ;;  %v392_v25 = vsub.f32 1.0, %v3044_v63 }
 0x3eb   :  { %v479_v8 = vadd.f32 1.0, %v3046_v7 }
 0x3ec   :  { %387 = vrot.lane.b32.xlu0 %v385_v0, %s3209_s20 }
 0x3ed   :  { %3047 = vrcp.f32 %v479_v8 }
 0x3f7   :  { %v3048_v10 = vpop.eup %3047 }
 0x3f8   :  { %v494_v20 = vsub.f32 1.0, %v3048_v10  ;;  %v500_v22 = vmul.f32 %v3048_v10, %v210_v45 }
 0x448   :  { %v485_v12 = vpop.permute.xlu1 %484 }
 0x449   :  { %v487_v13 = vmul.f32 %v3048_v10, %v485_v12 }
 0x44b   :  { %489 = vrot.lane.b32.xlu1 %v487_v13, %s3209_s20 }
 0x45e   :  { %v388_v14 = vpop.permute.xlu0 %387 }
 0x45f   :  { %v390_v15 = vadd.f32 %v388_v14, %v289_v53 }
 0x461   :  { %3049 = vtanh.f32 %v390_v15 }
 0x46b   :  { %v3050_v16 = vpop.eup %3049 }
 0x46c   :  { %394 = vrot.lane.b32.xlu0 %v3050_v16, %s3211_s27 }
 0x4bd   :  { %v490_v17 = vpop.permute.xlu1 %489 }
 0x4be   :  { %v492_v18 = vadd.f32 %v490_v17, %v404_v3 }
 0x4c0   :  { %3051 = vtanh.f32 %v492_v18 }
 0x4ca   :  { %v3052_v19 = vpop.eup %3051 }
 0x4cb   :  { %496 = vrot.lane.b32.xlu1 %v3052_v19, %s3211_s27 }
 0x4cf   :  { %398 = vrot.lane.b32.xlu1 %v3385_v37, %s3210_s3 }
 0x4de   :  { %v395_v24 = vpop.permute.xlu0 %394 }
 0x4df   :  { %v397_v29 = vmul.f32 %v395_v24, %v392_v25 }
 0x53d   :  { %v497_v21 = vpop.permute.xlu1 %496 }
 0x53e   :  { %v499_v23 = vmul.f32 %v497_v21, %v494_v20 }
 0x540   :  { %v3436_v26 = vadd.f32 %v500_v22, %v499_v23 }
 0x541   :  { %v399_v27 = vpop.permute.xlu1 %398 }
 0x542   :  { %v401_v30 = vmul.f32 %v3044_v63, %v399_v27  ;;  %503 = vrot.lane.b32.xlu0 %v3436_v26, %s3211_s27 }
 0x544   :  { %v3440_v31 = vadd.f32 %v401_v30, %v397_v29 }
 0x546   :  { %578 = vrot.lane.b32.xlu1 %v3440_v31, %s3211_s27 }
 0x5b4   :  { %v504_v32 = vpop.permute.xlu0 %503 }
 0x5b5   :  { %2652 = vmatmul.mubr.msk.f32.vlgmr.msra.gmra.mrb[4].mxu0 %vm99_vm1, %v504_v32 }
 0x5b6   :  { %2912 = vmatpush3.bf16.msra.mxu0 %v3342_v6  ;;  %2673 = vmatprep.mubr.msk.f32.mxu0 %vm3207_vm0, %v3208_v2 }
 0x5b7   :  { %2913 = vmatprep.subr.bf16.mxu0 %v3206_v1 }
 0x5b8   :  { %v579_v33 = vpop.permute.xlu1 %578 }
 0x5b9   :  { %2663 = vmatmul.mubr.msk.f32.vlgmr.msra.gmra.mrb[4].mxu1 %vm99_vm1, %v579_v33 }
 0x5ba   :  { %2915 = vmatpush3.bf16.msra.mxu0 %v3352_v9  ;;  %2918 = vmatpush3.bf16.msra.mxu1 %v3374_v35 }
 0x5bb   :  { %2922 = vmatprep.subr.bf16.mxu0 %v3206_v1  ;;  %2919 = vmatprep.subr.bf16.mxu1 %v3206_v1 }
 0x5bc   :  { %2684 = vmatprep.mubr.msk.f32.mxu1 %vm3207_vm0, %v3208_v2 }
 0x5bd   :  { %2674 = vmatmul.mubr.msk.f32.vlgmr.msra.gmra.mrb[6].mxu0 %vm99_vm1, %v504_v32 }
 0x5be   :  { %2924 = vmatpush3.bf16.msra.mxu0 %v3369_v28  ;;  %2921 = vmatpush3.bf16.msra.mxu1 %v3378_v36 }
 0x5bf   :  { %2925 = vmatprep.subr.bf16.mxu0 %v3206_v1  ;;  %2695 = vmatprep.mubr.msk.f32.mxu0 %vm3207_vm0, %v3208_v2 }
 0x5c0   :  { %2928 = vmatprep.subr.bf16.mxu1 %v3206_v1 }
 0x5c2   :  { %2927 = vmatpush3.bf16.msra.mxu0 %v3372_v34 }
 0x5c3   :  { %2934 = vmatprep.subr.bf16.mxu0 %v3206_v1 }
 0x688   :  { %v573_v37 = vpop.f32.mrb[4].mxu0 }
 0x689   :  { %v2653_v38 = vpop.f32.mrb[5].mxu0  ;;  %v574_v45 = vadd.f32 %v3425_v51, %v573_v37  ;;  %v956_v37 = vld [vmem:[#allocation3 + $0x18] sm:$0xff] }
 0x68c   :  { %v648_v39 = vpop.f32.mrb[4].mxu1 }
 0x68d   :  { %v659_v40 = vadd.f32 %v648_v39, %v3404_v48  ;;  %v2664_v41 = vpop.f32.mrb[5].mxu1  ;;  %v652_v46 = vadd.f32 %v648_v39, %v574_v45 }
 0x68f   :  { %661 = vrot.lane.b32.xlu1 %v659_v40, %s3209_s20  ;;  %v2441_v49 = vmul.f32 -1.442695, %v652_v46 }
 0x690   :  { %v747_v42 = vpop.f32.mrb[6].mxu0 }
 0x691   :  { %v758_v43 = vadd.f32 %v747_v42, %v3363_v11  ;;  %v2675_v44 = vpop.f32.mrb[7].mxu0  ;;  %v751_v50 = vadd.f32 %v747_v42, %v680_v47  ;;  %3053 = vpow2.f32 %v2441_v49 }
 0x693   :  { %760 = vrot.lane.b32.xlu0 %v758_v43, %s3209_s20  ;;  %v2443_v52 = vmul.f32 -1.442695, %v751_v50 }
 0x695   :  { %3055 = vpow2.f32 %v2443_v52 }
 0x69b   :  { %v3054_v53 = vpop.eup %3053 }
 0x69c   :  { %v656_v54 = vadd.f32 1.0, %v3054_v53 }
 0x69e   :  { %3057 = vrcp.f32 %v656_v54 }
 0x69f   :  { %v3056_v55 = vpop.eup %3055 }
 0x6a0   :  { %v755_v56 = vadd.f32 1.0, %v3056_v55 }
 0x6a2   :  { %3059 = vrcp.f32 %v755_v56 }
 0x6a8   :  { %v3058_v57 = vpop.eup %3057 }
 0x6a9   :  { %v671_v8 = vsub.f32 1.0, %v3058_v57  ;;  %v677_v12 = vmul.f32 %v3058_v57, %v3440_v31 }
 0x6ac   :  { %v3060_v60 = vpop.eup %3059 }
 0x6ad   :  { %v770_v15 = vsub.f32 1.0, %v3060_v60  ;;  %v776_v17 = vmul.f32 %v3060_v60, %v3436_v26 }
 0x701   :  { %v662_v58 = vpop.permute.xlu1 %661 }
 0x702   :  { %v664_v59 = vmul.f32 %v3058_v57, %v662_v58 }
 0x704   :  { %666 = vrot.lane.b32.xlu1 %v664_v59, %s3209_s20 }
 0x705   :  { %v761_v61 = vpop.permute.xlu0 %760 }
 0x706   :  { %v763_v62 = vmul.f32 %v3060_v60, %v761_v61 }
 0x708   :  { %765 = vrot.lane.b32.xlu0 %v763_v62, %s3209_s20 }
 0x776   :  { %v667_v63 = vpop.permute.xlu1 %666 }
 0x777   :  { %v669_v0 = vadd.f32 %v667_v63, %v574_v45 }
 0x779   :  { %3061 = vtanh.f32 %v669_v0 }
 0x77a   :  { %v766_v3 = vpop.permute.xlu0 %765 }
 0x77b   :  { %v768_v4 = vadd.f32 %v766_v3, %v680_v47 }
 0x77d   :  { %3063 = vtanh.f32 %v768_v4 }
 0x783   :  { %v3062_v5 = vpop.eup %3061 }
 0x784   :  { %673 = vrot.lane.b32.xlu1 %v3062_v5, %s3211_s27 }
 0x787   :  { %v3064_v7 = vpop.eup %3063 }
 0x788   :  { %772 = vrot.lane.b32.xlu0 %v3064_v7, %s3211_s27 }
 0x7f6   :  { %v674_v10 = vpop.permute.xlu1 %673 }
 0x7f7   :  { %v676_v13 = vmul.f32 %v674_v10, %v671_v8 }
 0x7f9   :  { %v3475_v14 = vadd.f32 %v677_v12, %v676_v13 }
 0x7fa   :  { %v773_v16 = vpop.permute.xlu0 %772 }
 0x7fb   :  { %v775_v18 = vmul.f32 %v773_v16, %v770_v15  ;;  %854 = vrot.lane.b32.xlu1 %v3475_v14, %s3211_s27 }
 0x7fd   :  { %v3480_v19 = vadd.f32 %v776_v17, %v775_v18 }
 0x7ff   :  { %779 = vrot.lane.b32.xlu0 %v3480_v19, %s3211_s27 }
 0x86d   :  { %v855_v20 = vpop.permute.xlu1 %854 }
 0x86e   :  { %2696 = vmatmul.mubr.msk.f32.vlgmr.msra.gmra.mrb[8].mxu0 %vm99_vm1, %v855_v20 }
 0x86f   :  { %2936 = vmatpush3.bf16.msra.mxu0 %v3374_v35  ;;  %2717 = vmatprep.mubr.msk.f32.mxu0 %vm3207_vm0, %v3208_v2 }
 0x870   :  { %2937 = vmatprep.subr.bf16.mxu0 %v3206_v1 }
 0x871   :  { %v780_v21 = vpop.permute.xlu0 %779 }
 0x872   :  { %2685 = vmatmul.mubr.msk.f32.vlgmr.msra.gmra.mrb[6].mxu1 %vm99_vm1, %v780_v21 }
 0x873   :  { %2930 = vmatpush3.bf16.msra.mxu1 %v3342_v6  ;;  %2706 = vmatprep.mubr.msk.f32.mxu1 %vm3207_vm0, %v3208_v2 }
 0x874   :  { %2931 = vmatprep.subr.bf16.mxu1 %v3206_v1  ;;  %2939 = vmatpush3.bf16.msra.mxu0 %v3378_v36 }
 0x875   :  { %2946 = vmatprep.subr.bf16.mxu0 %v3206_v1 }
 0x877   :  { %2933 = vmatpush3.bf16.msra.mxu1 %v3352_v9 }
 0x878   :  { %2940 = vmatprep.subr.bf16.mxu1 %v3206_v1 }
 0x87a   :  { %2707 = vmatmul.mubr.msk.f32.vlgmr.msra.gmra.mrb[8].mxu1 %vm99_vm1, %v780_v21 }
 0x87b   :  { %2942 = vmatpush3.bf16.msra.mxu1 %v3369_v28  ;;  %2728 = vmatprep.mubr.msk.f32.mxu1 %vm3207_vm0, %v3208_v2 }
 0x87c   :  { %2943 = vmatprep.subr.bf16.mxu1 %v3206_v1 }
 0x87f   :  { %2945 = vmatpush3.bf16.msra.mxu1 %v3372_v34 }
 0x880   :  { %2952 = vmatprep.subr.bf16.mxu1 %v3206_v1 }
 0x941   :  { %v924_v22 = vpop.f32.mrb[8].mxu0 }
 0x942   :  { %v935_v23 = vadd.f32 %v924_v22, %v3404_v48  ;;  %v2697_v24 = vpop.f32.mrb[9].mxu0 }
 0x944   :  { %937 = vrot.lane.b32.xlu0 %v935_v23, %s3209_s20 }
 0x945   :  { %v849_v25 = vpop.f32.mrb[6].mxu1 }
 0x946   :  { %v2686_v26 = vpop.f32.mrb[7].mxu1  ;;  %v850_v31 = vadd.f32 %v3425_v51, %v849_v25 }
 0x948   :  { %v928_v32 = vadd.f32 %v924_v22, %v850_v31  ;;  %v1232_v22 = vld [vmem:[#allocation3 + $0x20] sm:$0xff] }
 0x94a   :  { %v2446_v33 = vmul.f32 -1.442695, %v928_v32 }
 0x94c   :  { %3065 = vpow2.f32 %v2446_v33 }
 0x94d   :  { %v1023_v27 = vpop.f32.mrb[8].mxu1 }
 0x94e   :  { %v1034_v29 = vadd.f32 %v1023_v27, %v3363_v11  ;;  %v2708_v30 = vpop.f32.mrb[9].mxu1  ;;  %v1027_v38 = vadd.f32 %v1023_v27, %v956_v37 }
 0x950   :  { %1036 = vrot.lane.b32.xlu1 %v1034_v29, %s3209_s20  ;;  %v2448_v39 = vmul.f32 -1.442695, %v1027_v38 }
 0x952   :  { %3067 = vpow2.f32 %v2448_v39 }
 0x956   :  { %v3066_v40 = vpop.eup %3065 }
 0x957   :  { %v932_v41 = vadd.f32 1.0, %v3066_v40 }
 0x959   :  { %3069 = vrcp.f32 %v932_v41 }
 0x95c   :  { %v3068_v42 = vpop.eup %3067 }
 0x95d   :  { %v1031_v43 = vadd.f32 1.0, %v3068_v42 }
 0x95f   :  { %3071 = vrcp.f32 %v1031_v43 }
 0x963   :  { %v3070_v44 = vpop.eup %3069 }
 0x964   :  { %v947_v58 = vsub.f32 1.0, %v3070_v44  ;;  %v953_v60 = vmul.f32 %v3070_v44, %v3475_v14 }
 0x969   :  { %v3072_v47 = vpop.eup %3071 }
 0x96a   :  { %v1046_v63 = vsub.f32 1.0, %v3072_v47  ;;  %v1052_v3 = vmul.f32 %v3072_v47, %v3480_v19 }
 0x9b6   :  { %v938_v45 = vpop.permute.xlu0 %937 }
 0x9b7   :  { %v940_v46 = vmul.f32 %v3070_v44, %v938_v45 }
 0x9b9   :  { %942 = vrot.lane.b32.xlu0 %v940_v46, %s3209_s20 }
 0x9c2   :  { %v1037_v49 = vpop.permute.xlu1 %1036 }
 0x9c3   :  { %v1039_v50 = vmul.f32 %v3072_v47, %v1037_v49 }
 0x9c5   :  { %1041 = vrot.lane.b32.xlu1 %v1039_v50, %s3209_s20 }
 0xa2b   :  { %v943_v52 = vpop.permute.xlu0 %942 }
 0xa2c   :  { %v945_v53 = vadd.f32 %v943_v52, %v850_v31 }
 0xa2e   :  { %3073 = vtanh.f32 %v945_v53 }
 0xa37   :  { %v1042_v54 = vpop.permute.xlu1 %1041 }
 0xa38   :  { %v3074_v55 = vpop.eup %3073  ;;  %v1044_v56 = vadd.f32 %v1042_v54, %v956_v37 }
 0xa39   :  { %949 = vrot.lane.b32.xlu0 %v3074_v55, %s3211_s27 }
 0xa3a   :  { %3075 = vtanh.f32 %v1044_v56 }
 0xa44   :  { %v3076_v57 = vpop.eup %3075 }
 0xa45   :  { %1048 = vrot.lane.b32.xlu1 %v3076_v57, %s3211_s27 }
 0xaab   :  { %v950_v59 = vpop.permute.xlu0 %949 }
 0xaac   :  { %v952_v61 = vmul.f32 %v950_v59, %v947_v58 }
 0xaae   :  { %v3515_v62 = vadd.f32 %v953_v60, %v952_v61 }
 0xab0   :  { %1130 = vrot.lane.b32.xlu0 %v3515_v62, %s3211_s27 }
 0xab7   :  { %v1049_v0 = vpop.permute.xlu1 %1048 }
 0xab8   :  { %v1051_v4 = vmul.f32 %v1049_v0, %v1046_v63 }
 0xaba   :  { %v3520_v5 = vadd.f32 %v1052_v3, %v1051_v4 }
 0xabc   :  { %1055 = vrot.lane.b32.xlu1 %v3520_v5, %s3211_s27 }
 0xb22   :  { %v1131_v7 = vpop.permute.xlu0 %1130 }
 0xb23   :  { %2729 = vmatmul.mubr.msk.f32.vlgmr.msra.gmra.mrb[10].mxu1 %vm99_vm1, %v1131_v7 }
 0xb24   :  { %2954 = vmatpush3.bf16.msra.mxu1 %v3374_v35  ;;  %2750 = vmatprep.mubr.msk.f32.mxu1 %vm3207_vm0, %v3208_v2 }
 0xb25   :  { %2955 = vmatprep.subr.bf16.mxu1 %v3206_v1 }
 0xb28   :  { %2957 = vmatpush3.bf16.msra.mxu1 %v3378_v36 }
 0xb29   :  { %2964 = vmatprep.subr.bf16.mxu1 %v3206_v1 }
 0xb2e   :  { %v1056_v8 = vpop.permute.xlu1 %1055 }
 0xb2f   :  { %2718 = vmatmul.mubr.msk.f32.vlgmr.msra.gmra.mrb[10].mxu0 %vm99_vm1, %v1056_v8 }
 0xb30   :  { %2948 = vmatpush3.bf16.msra.mxu0 %v3342_v6  ;;  %2739 = vmatprep.mubr.msk.f32.mxu0 %vm3207_vm0, %v3208_v2 }
 0xb31   :  { %2949 = vmatprep.subr.bf16.mxu0 %v3206_v1 }
 0xb34   :  { %2951 = vmatpush3.bf16.msra.mxu0 %v3352_v9 }
 0xb35   :  { %2958 = vmatprep.subr.bf16.mxu0 %v3206_v1 }
 0xb37   :  { %2740 = vmatmul.mubr.msk.f32.vlgmr.msra.gmra.mrb[12].mxu0 %vm99_vm1, %v1056_v8 }
 0xb38   :  { %2960 = vmatpush3.bf16.msra.mxu0 %v3369_v28  ;;  %2761 = vmatprep.mubr.msk.f32.mxu0 %vm3207_vm0, %v3208_v2 }
 0xb39   :  { %2961 = vmatprep.subr.bf16.mxu0 %v3206_v1 }
 0xb3c   :  { %2963 = vmatpush3.bf16.msra.mxu0 %v3372_v34 }
 0xb3d   :  { %2970 = vmatprep.subr.bf16.mxu0 %v3206_v1 }
 0xbf6   :  { %v1200_v10 = vpop.f32.mrb[10].mxu1 }
 0xbf7   :  { %v1211_v12 = vadd.f32 %v1200_v10, %v3404_v48  ;;  %v2730_v13 = vpop.f32.mrb[11].mxu1 }
 0xbf8   :  { %v1508_v13 = vld [vmem:[#allocation3 + $0x28] sm:$0xff] }
 0xbf9   :  { %1213 = vrot.lane.b32.xlu0 %v1211_v12, %s3209_s20 }
 0xc02   :  { %v1125_v14 = vpop.f32.mrb[10].mxu0 }
 0xc03   :  { %v2719_v15 = vpop.f32.mrb[11].mxu0  ;;  %v1126_v19 = vadd.f32 %v3425_v51, %v1125_v14 }
 0xc05   :  { %v1204_v20 = vadd.f32 %v1200_v10, %v1126_v19 }
 0xc07   :  { %v2451_v21 = vmul.f32 -1.442695, %v1204_v20 }
 0xc09   :  { %3077 = vpow2.f32 %v2451_v21 }
 0xc0a   :  { %v1299_v16 = vpop.f32.mrb[12].mxu0 }
 0xc0b   :  { %v1310_v17 = vadd.f32 %v1299_v16, %v3363_v11  ;;  %v2741_v18 = vpop.f32.mrb[13].mxu0  ;;  %v1303_v24 = vadd.f32 %v1299_v16, %v1232_v22 }
 0xc0d   :  { %1312 = vrot.lane.b32.xlu1 %v1310_v17, %s3209_s20  ;;  %v2453_v26 = vmul.f32 -1.442695, %v1303_v24 }
 0xc13   :  { %v3078_v23 = vpop.eup %3077 }
 0xc14   :  { %v1208_v25 = vadd.f32 1.0, %v3078_v23 }
 0xc16   :  { %3079 = vrcp.f32 %v1208_v25 }
 0xc17   :  { %3081 = vpow2.f32 %v2453_v26 }
 0xc20   :  { %v3080_v27 = vpop.eup %3079 }
 0xc21   :  { %v3082_v31 = vpop.eup %3081  ;;  %v1223_v45 = vsub.f32 1.0, %v3080_v27  ;;  %v1229_v47 = vmul.f32 %v3080_v27, %v3515_v62 }
 0xc22   :  { %v1307_v32 = vadd.f32 1.0, %v3082_v31 }
 0xc24   :  { %3083 = vrcp.f32 %v1307_v32 }
 0xc2e   :  { %v3084_v33 = vpop.eup %3083 }
 0xc2f   :  { %v1322_v52 = vsub.f32 1.0, %v3084_v33  ;;  %v1328_v54 = vmul.f32 %v3084_v33, %v3520_v5 }
 0xc6b   :  { %v1214_v29 = vpop.permute.xlu0 %1213 }
 0xc6c   :  { %v1216_v30 = vmul.f32 %v3080_v27, %v1214_v29 }
 0xc6e   :  { %1218 = vrot.lane.b32.xlu0 %v1216_v30, %s3209_s20 }
 0xc7f   :  { %v1313_v37 = vpop.permute.xlu1 %1312 }
 0xc80   :  { %v1315_v38 = vmul.f32 %v3084_v33, %v1313_v37 }
 0xc82   :  { %1317 = vrot.lane.b32.xlu1 %v1315_v38, %s3209_s20 }
 0xce0   :  { %v1219_v39 = vpop.permute.xlu0 %1218 }
 0xce1   :  { %v1221_v40 = vadd.f32 %v1219_v39, %v1126_v19 }
 0xce3   :  { %3085 = vtanh.f32 %v1221_v40 }
 0xced   :  { %v3086_v41 = vpop.eup %3085 }
 0xcee   :  { %1225 = vrot.lane.b32.xlu0 %v3086_v41, %s3211_s27 }
 0xcf4   :  { %v1318_v42 = vpop.permute.xlu1 %1317 }
 0xcf5   :  { %v1320_v43 = vadd.f32 %v1318_v42, %v1232_v22 }
 0xcf7   :  { %3087 = vtanh.f32 %v1320_v43 }
 0xd01   :  { %v3088_v44 = vpop.eup %3087 }
 0xd02   :  { %1324 = vrot.lane.b32.xlu1 %v3088_v44, %s3211_s27 }
 0xd60   :  { %v1226_v46 = vpop.permute.xlu0 %1225 }
 0xd61   :  { %v1228_v49 = vmul.f32 %v1226_v46, %v1223_v45 }
 0xd63   :  { %v3555_v50 = vadd.f32 %v1229_v47, %v1228_v49 }
 0xd65   :  { %1406 = vrot.lane.b32.xlu0 %v3555_v50, %s3211_s27 }
 0xd74   :  { %v1325_v53 = vpop.permute.xlu1 %1324 }
 0xd75   :  { %v1327_v55 = vmul.f32 %v1325_v53, %v1322_v52 }
 0xd77   :  { %v3560_v56 = vadd.f32 %v1328_v54, %v1327_v55 }
 0xd79   :  { %1331 = vrot.lane.b32.xlu1 %v3560_v56, %s3211_s27 }
 0xdd7   :  { %v1407_v57 = vpop.permute.xlu0 %1406 }
 0xdd8   :  { %2762 = vmatmul.mubr.msk.f32.vlgmr.msra.gmra.mrb[14].mxu0 %vm99_vm1, %v1407_v57 }
 0xdd9   :  { %2972 = vmatpush3.bf16.msra.mxu0 %v3374_v35  ;;  %2783 = vmatprep.mubr.msk.f32.mxu0 %vm3207_vm0, %v3208_v2 }
 0xdda   :  { %2973 = vmatprep.subr.bf16.mxu0 %v3206_v1 }
 0xddd   :  { %2975 = vmatpush3.bf16.msra.mxu0 %v3378_v36 }
 0xdde   :  { %2982 = vmatprep.subr.bf16.mxu0 %v3206_v1 }
 0xdeb   :  { %v1332_v58 = vpop.permute.xlu1 %1331 }
 0xdec   :  { %2751 = vmatmul.mubr.msk.f32.vlgmr.msra.gmra.mrb[12].mxu1 %vm99_vm1, %v1332_v58 }
 0xded   :  { %2966 = vmatpush3.bf16.msra.mxu1 %v3342_v6  ;;  %2772 = vmatprep.mubr.msk.f32.mxu1 %vm3207_vm0, %v3208_v2 }
 0xdee   :  { %2967 = vmatprep.subr.bf16.mxu1 %v3206_v1 }
 0xdf1   :  { %2969 = vmatpush3.bf16.msra.mxu1 %v3352_v9 }
 0xdf2   :  { %2976 = vmatprep.subr.bf16.mxu1 %v3206_v1 }
 0xdf4   :  { %2773 = vmatmul.mubr.msk.f32.vlgmr.msra.gmra.mrb[14].mxu1 %vm99_vm1, %v1332_v58 }
 0xdf5   :  { %2978 = vmatpush3.bf16.msra.mxu1 %v3369_v28  ;;  %2794 = vmatprep.mubr.msk.f32.mxu1 %vm3207_vm0, %v3208_v2 }
 0xdf6   :  { %2979 = vmatprep.subr.bf16.mxu1 %v3206_v1 }
 0xdf9   :  { %2981 = vmatpush3.bf16.msra.mxu1 %v3372_v34 }
 0xdfa   :  { %2988 = vmatprep.subr.bf16.mxu1 %v3206_v1 }
 0xeab   :  { %v1476_v59 = vpop.f32.mrb[14].mxu0 }
 0xeac   :  { %v1487_v60 = vadd.f32 %v1476_v59, %v3404_v48  ;;  %v2763_v61 = vpop.f32.mrb[15].mxu0 }
 0xead   :  { %v1784_v61 = vld [vmem:[#allocation3 + $0x30] sm:$0xff] }
 0xeae   :  { %1489 = vrot.lane.b32.xlu0 %v1487_v60, %s3209_s20 }
 0xebf   :  { %v1401_v62 = vpop.f32.mrb[12].mxu1 }
 0xec0   :  { %v2752_v63 = vpop.f32.mrb[13].mxu1  ;;  %v1402_v5 = vadd.f32 %v3425_v51, %v1401_v62 }
 0xec2   :  { %v1480_v7 = vadd.f32 %v1476_v59, %v1402_v5 }
 0xec4   :  { %v2456_v8 = vmul.f32 -1.442695, %v1480_v7 }
 0xec6   :  { %3089 = vpow2.f32 %v2456_v8 }
 0xec7   :  { %v1575_v0 = vpop.f32.mrb[14].mxu1 }
 0xec8   :  { %v1586_v3 = vadd.f32 %v1575_v0, %v3363_v11  ;;  %v2774_v4 = vpop.f32.mrb[15].mxu1  ;;  %v1579_v14 = vadd.f32 %v1575_v0, %v1508_v13 }
 0xeca   :  { %1588 = vrot.lane.b32.xlu1 %v1586_v3, %s3209_s20  ;;  %v2458_v15 = vmul.f32 -1.442695, %v1579_v14 }
 0xed0   :  { %v3090_v10 = vpop.eup %3089 }
 0xed1   :  { %v1484_v12 = vadd.f32 1.0, %v3090_v10 }
 0xed3   :  { %3091 = vrcp.f32 %v1484_v12 }
 0xed4   :  { %3093 = vpow2.f32 %v2458_v15 }
 0xedd   :  { %v3092_v16 = vpop.eup %3091 }
 0xede   :  { %v3094_v19 = vpop.eup %3093  ;;  %v1499_v31 = vsub.f32 1.0, %v3092_v16  ;;  %v1505_v33 = vmul.f32 %v3092_v16, %v3555_v50 }
 0xedf   :  { %v1583_v20 = vadd.f32 1.0, %v3094_v19 }
 0xee1   :  { %3095 = vrcp.f32 %v1583_v20 }
 0xeeb   :  { %v3096_v21 = vpop.eup %3095 }
 0xeec   :  { %v1598_v39 = vsub.f32 1.0, %v3096_v21  ;;  %v1604_v41 = vmul.f32 %v3096_v21, %v3560_v56 }
 0xf20   :  { %v1490_v17 = vpop.permute.xlu0 %1489 }
 0xf21   :  { %v1492_v18 = vmul.f32 %v3092_v16, %v1490_v17 }
 0xf23   :  { %1494 = vrot.lane.b32.xlu0 %v1492_v18, %s3209_s20 }
 0xf3c   :  { %v1589_v22 = vpop.permute.xlu1 %1588 }
 0xf3d   :  { %v1591_v23 = vmul.f32 %v3096_v21, %v1589_v22 }
 0xf3f   :  { %1593 = vrot.lane.b32.xlu1 %v1591_v23, %s3209_s20 }
 0xf95   :  { %v1495_v24 = vpop.permute.xlu0 %1494 }
 0xf96   :  { %v1497_v25 = vadd.f32 %v1495_v24, %v1402_v5 }
 0xf98   :  { %3097 = vtanh.f32 %v1497_v25 }
 0xfa2   :  { %v3098_v26 = vpop.eup %3097 }
 0xfa3   :  { %1501 = vrot.lane.b32.xlu0 %v3098_v26, %s3211_s27 }
 0xfb1   :  { %v1594_v27 = vpop.permute.xlu1 %1593 }
 0xfb2   :  { %v1596_v29 = vadd.f32 %v1594_v27, %v1508_v13 }
 0xfb4   :  { %3099 = vtanh.f32 %v1596_v29 }
 0xfbe   :  { %v3100_v30 = vpop.eup %3099 }
 0xfbf   :  { %1600 = vrot.lane.b32.xlu1 %v3100_v30, %s3211_s27 }
0x1015   :  { %v1502_v32 = vpop.permute.xlu0 %1501 }
0x1016   :  { %v1504_v37 = vmul.f32 %v1502_v32, %v1499_v31 }
0x1018   :  { %v3595_v38 = vadd.f32 %v1505_v33, %v1504_v37 }
0x101a   :  { %1682 = vrot.lane.b32.xlu0 %v3595_v38, %s3211_s27 }
0x1031   :  { %v1601_v40 = vpop.permute.xlu1 %1600 }
0x1032   :  { %v1603_v42 = vmul.f32 %v1601_v40, %v1598_v39 }
0x1034   :  { %v3600_v43 = vadd.f32 %v1604_v41, %v1603_v42 }
0x1036   :  { %1607 = vrot.lane.b32.xlu1 %v3600_v43, %s3211_s27 }
0x108c   :  { %v1683_v44 = vpop.permute.xlu0 %1682 }
0x108d   :  { %2795 = vmatmul.mubr.msk.f32.vlgmr.msra.gmra.mrb[16].mxu1 %vm99_vm1, %v1683_v44 }
0x108e   :  { %2990 = vmatpush3.bf16.msra.mxu1 %v3374_v35  ;;  %2816 = vmatprep.mubr.msk.f32.mxu1 %vm3207_vm0, %v3208_v2 }
0x108f   :  { %2991 = vmatprep.subr.bf16.mxu1 %v3206_v1 }
0x1092   :  { %2993 = vmatpush3.bf16.msra.mxu1 %v3378_v36 }
0x1093   :  { %3000 = vmatprep.subr.bf16.mxu1 %v3206_v1 }
0x10a8   :  { %v1608_v45 = vpop.permute.xlu1 %1607 }
0x10a9   :  { %2784 = vmatmul.mubr.msk.f32.vlgmr.msra.gmra.mrb[16].mxu0 %vm99_vm1, %v1608_v45 }
0x10aa   :  { %2984 = vmatpush3.bf16.msra.mxu0 %v3342_v6  ;;  %2805 = vmatprep.mubr.msk.f32.mxu0 %vm3207_vm0, %v3208_v2 }
0x10ab   :  { %2985 = vmatprep.subr.bf16.mxu0 %v3206_v1 }
0x10ae   :  { %2987 = vmatpush3.bf16.msra.mxu0 %v3352_v9 }
0x10af   :  { %2994 = vmatprep.subr.bf16.mxu0 %v3206_v1 }
0x10b1   :  { %2806 = vmatmul.mubr.msk.f32.vlgmr.msra.gmra.mrb[18].mxu0 %vm99_vm1, %v1608_v45  ;;  %v2060_v45 = vld [vmem:[#allocation3 + $0x38] sm:$0xff] }
0x10b2   :  { %2996 = vmatpush3.bf16.msra.mxu0 %v3369_v28  ;;  %2827 = vmatprep.mubr.msk.f32.mxu0 %vm3207_vm0, %v3208_v2 }
0x10b3   :  { %2997 = vmatprep.subr.bf16.mxu0 %v3206_v1 }
0x10b6   :  { %2999 = vmatpush3.bf16.msra.mxu0 %v3372_v34 }
0x10b7   :  { %3006 = vmatprep.subr.bf16.mxu0 %v3206_v1 }
0x1160   :  { %v1752_v46 = vpop.f32.mrb[16].mxu1 }
0x1161   :  { %v1763_v47 = vadd.f32 %v1752_v46, %v3404_v48  ;;  %v2796_v49 = vpop.f32.mrb[17].mxu1 }
0x1163   :  { %1765 = vrot.lane.b32.xlu0 %v1763_v47, %s3209_s20 }
0x117c   :  { %v1677_v50 = vpop.f32.mrb[16].mxu0 }
0x117d   :  { %v2785_v52 = vpop.f32.mrb[17].mxu0  ;;  %v1678_v56 = vadd.f32 %v3425_v51, %v1677_v50 }
0x117f   :  { %v1756_v57 = vadd.f32 %v1752_v46, %v1678_v56 }
0x1181   :  { %v2461_v58 = vmul.f32 -1.442695, %v1756_v57 }
0x1183   :  { %3101 = vpow2.f32 %v2461_v58 }
0x1184   :  { %v1851_v53 = vpop.f32.mrb[18].mxu0 }
0x1185   :  { %v1862_v54 = vadd.f32 %v1851_v53, %v3363_v11  ;;  %v2807_v55 = vpop.f32.mrb[19].mxu0  ;;  %v1855_v0 = vadd.f32 %v1851_v53, %v1784_v61 }
0x1187   :  { %1864 = vrot.lane.b32.xlu1 %v1862_v54, %s3209_s20  ;;  %v2463_v4 = vmul.f32 -1.442695, %v1855_v0 }
0x118d   :  { %v3102_v59 = vpop.eup %3101 }
0x118e   :  { %v1760_v60 = vadd.f32 1.0, %v3102_v59 }
0x1190   :  { %3103 = vrcp.f32 %v1760_v60 }
0x1191   :  { %3105 = vpow2.f32 %v2463_v4 }
0x119a   :  { %v3104_v62 = vpop.eup %3103 }
0x119b   :  { %v3106_v5 = vpop.eup %3105  ;;  %v1775_v19 = vsub.f32 1.0, %v3104_v62  ;;  %v1781_v21 = vmul.f32 %v3104_v62, %v3595_v38 }
0x119c   :  { %v1859_v7 = vadd.f32 1.0, %v3106_v5 }
0x119e   :  { %3107 = vrcp.f32 %v1859_v7 }
0x11a8   :  { %v3108_v8 = vpop.eup %3107 }
0x11a9   :  { %v1874_v24 = vsub.f32 1.0, %v3108_v8  ;;  %v1880_v26 = vmul.f32 %v3108_v8, %v3600_v43 }
0x11d5   :  { %v1766_v63 = vpop.permute.xlu0 %1765 }
0x11d6   :  { %v1768_v3 = vmul.f32 %v3104_v62, %v1766_v63 }
0x11d8   :  { %1770 = vrot.lane.b32.xlu0 %v1768_v3, %s3209_s20 }
0x11f9   :  { %v1865_v10 = vpop.permute.xlu1 %1864 }
0x11fa   :  { %v1867_v12 = vmul.f32 %v3108_v8, %v1865_v10 }
0x11fc   :  { %1869 = vrot.lane.b32.xlu1 %v1867_v12, %s3209_s20 }
0x124a   :  { %v1771_v13 = vpop.permute.xlu0 %1770 }
0x124b   :  { %v1773_v14 = vadd.f32 %v1771_v13, %v1678_v56 }
0x124d   :  { %3109 = vtanh.f32 %v1773_v14 }
0x1257   :  { %v3110_v15 = vpop.eup %3109 }
0x1258   :  { %1777 = vrot.lane.b32.xlu0 %v3110_v15, %s3211_s27 }
0x126e   :  { %v1870_v16 = vpop.permute.xlu1 %1869 }
0x126f   :  { %v1872_v17 = vadd.f32 %v1870_v16, %v1784_v61 }
0x1271   :  { %3111 = vtanh.f32 %v1872_v17 }
0x127b   :  { %v3112_v18 = vpop.eup %3111 }
0x127c   :  { %1876 = vrot.lane.b32.xlu1 %v3112_v18, %s3211_s27 }
0x12ca   :  { %v1778_v20 = vpop.permute.xlu0 %1777 }
0x12cb   :  { %v1780_v22 = vmul.f32 %v1778_v20, %v1775_v19 }
0x12cd   :  { %v3635_v23 = vadd.f32 %v1781_v21, %v1780_v22 }
0x12cf   :  { %1958 = vrot.lane.b32.xlu0 %v3635_v23, %s3211_s27 }
0x12ee   :  { %v1877_v25 = vpop.permute.xlu1 %1876 }
0x12ef   :  { %v1879_v27 = vmul.f32 %v1877_v25, %v1874_v24 }
0x12f1   :  { %v3640_v29 = vadd.f32 %v1880_v26, %v1879_v27  ;;  %v2335_v26 = vld [vmem:[%s3713_s9] sm:$0xff]  ;;  %v2337_v27 = vld [vmem:[%s3713_s9 + $0x10] sm:$0xff] }
0x12f3   :  { %1883 = vrot.lane.b32.xlu1 %v3640_v29, %s3211_s27 }
0x1341   :  { %v1959_v30 = vpop.permute.xlu0 %1958 }
0x1342   :  { %2828 = vmatmul.mubr.msk.f32.vlgmr.msra.gmra.mrb[20].mxu0 %vm99_vm1, %v1959_v30  ;;  %v2338_v30 = vld [vmem:[%s3713_s9 + $0x18] sm:$0xff] }
0x1343   :  { %3008 = vmatpush3.bf16.msra.mxu0 %v3374_v35  ;;  %2849 = vmatprep.mubr.msk.f32.mxu0 %vm3207_vm0, %v3208_v2 }
0x1344   :  { %3009 = vmatprep.subr.bf16.mxu0 %v3206_v1 }
0x1347   :  { %3011 = vmatpush3.bf16.msra.mxu0 %v3378_v36 }
0x1348   :  { %3018 = vmatprep.subr.bf16.mxu0 %v3206_v1 }
0x1365   :  { %v1884_v31 = vpop.permute.xlu1 %1883 }
0x1366   :  { %2817 = vmatmul.mubr.msk.f32.vlgmr.msra.gmra.mrb[18].mxu1 %vm99_vm1, %v1884_v31 }
0x1367   :  { %3002 = vmatpush3.bf16.msra.mxu1 %v3342_v6  ;;  %2838 = vmatprep.mubr.msk.f32.mxu1 %vm3207_vm0, %v3208_v2 }
0x1368   :  { %3003 = vmatprep.subr.bf16.mxu1 %v3206_v1 }
0x136b   :  { %3005 = vmatpush3.bf16.msra.mxu1 %v3352_v9 }
0x136c   :  { %3012 = vmatprep.subr.bf16.mxu1 %v3206_v1 }
0x136e   :  { %2839 = vmatmul.mubr.msk.f32.vlgmr.msra.gmra.mrb[20].mxu1 %vm99_vm1, %v1884_v31  ;;  %v3022_v31 = vpack.c.bf16 %v2338_v30, %v2337_v27 }
0x136f   :  { %3014 = vmatpush3.bf16.msra.mxu1 %v3369_v28  ;;  %2860 = vmatprep.mubr.msk.f32.mxu1 %vm3207_vm0, %v3208_v2 }
0x1370   :  { %3015 = vmatprep.subr.bf16.mxu1 %v3206_v1 }
0x1373   :  { %3017 = vmatpush3.bf16.msra.mxu1 %v3372_v34 }
0x1415   :  { %v2028_v6 = vpop.f32.mrb[20].mxu0 }
0x1416   :  { %v2039_v35 = vadd.f32 %v2028_v6, %v3404_v48  ;;  %v2829_v36 = vpop.f32.mrb[21].mxu0 }
0x1418   :  { %2041 = vrot.lane.b32.xlu0 %v2039_v35, %s3209_s20 }
0x1439   :  { %v1953_v9 = vpop.f32.mrb[18].mxu1 }
0x143a   :  { %v2818_v32 = vpop.f32.mrb[19].mxu1  ;;  %v1954_v28 = vadd.f32 %v3425_v51, %v1953_v9 }
0x143c   :  { %v2032_v39 = vadd.f32 %v2028_v6, %v1954_v28 }
0x143e   :  { %v2466_v40 = vmul.f32 -1.442695, %v2032_v39 }
0x1440   :  { %3113 = vpow2.f32 %v2466_v40 }
0x1441   :  { %v2127_v33 = vpop.f32.mrb[20].mxu1 }
0x1442   :  { %v2138_v37 = vadd.f32 %v2127_v33, %v3363_v11  ;;  %v2840_v38 = vpop.f32.mrb[21].mxu1  ;;  %v2131_v46 = vadd.f32 %v2127_v33, %v2060_v45 }
0x1443   :  { %v2472_v38 = vld [vmem:[#allocation2] ss:$0 sm:$0xff] }
0x1444   :  { %2140 = vrot.lane.b32.xlu1 %v2138_v37, %s3209_s20  ;;  %v2468_v47 = vmul.f32 -1.442695, %v2131_v46 }
0x144a   :  { %v3114_v34 = vpop.eup %3113 }
0x144b   :  { %v2036_v41 = vadd.f32 1.0, %v3114_v34 }
0x144d   :  { %3115 = vrcp.f32 %v2036_v41 }
0x144e   :  { %3117 = vpow2.f32 %v2468_v47 }
0x1457   :  { %v3116_v42 = vpop.eup %3115 }
0x1458   :  { %v3118_v11 = vpop.eup %3117  ;;  %v2051_v60 = vsub.f32 1.0, %v3116_v42  ;;  %v2057_v62 = vmul.f32 %v3116_v42, %v3635_v23 }
0x1459   :  { %v2135_v49 = vadd.f32 1.0, %v3118_v11 }
0x145b   :  { %3119 = vrcp.f32 %v2135_v49 }
0x1465   :  { %v3120_v50 = vpop.eup %3119 }
0x1466   :  { %v2150_v3 = vsub.f32 1.0, %v3120_v50  ;;  %v2156_v5 = vmul.f32 %v3120_v50, %v3640_v29 }
0x148a   :  { %v2042_v43 = vpop.permute.xlu0 %2041 }
0x148b   :  { %v2044_v44 = vmul.f32 %v3116_v42, %v2042_v43 }
0x148d   :  { %2046 = vrot.lane.b32.xlu0 %v2044_v44, %s3209_s20 }
0x14b6   :  { %v2141_v52 = vpop.permute.xlu1 %2140 }
0x14b7   :  { %v2143_v53 = vmul.f32 %v3120_v50, %v2141_v52 }
0x14b9   :  { %2145 = vrot.lane.b32.xlu1 %v2143_v53, %s3209_s20 }
0x14ff   :  { %v2047_v54 = vpop.permute.xlu0 %2046 }
0x1500   :  { %v2049_v55 = vadd.f32 %v2047_v54, %v1954_v28 }
0x1502   :  { %3121 = vtanh.f32 %v2049_v55 }
0x150c   :  { %v3122_v56 = vpop.eup %3121 }
0x150d   :  { %2053 = vrot.lane.b32.xlu0 %v3122_v56, %s3211_s27 }
0x152b   :  { %v2146_v57 = vpop.permute.xlu1 %2145 }
0x152c   :  { %v2148_v58 = vadd.f32 %v2146_v57, %v2060_v45 }
0x152e   :  { %3123 = vtanh.f32 %v2148_v58 }
0x1538   :  { %v3124_v59 = vpop.eup %3123 }
0x1539   :  { %2152 = vrot.lane.b32.xlu1 %v3124_v59, %s3211_s27 }
0x157f   :  { %v2054_v61 = vpop.permute.xlu0 %2053 }
0x1580   :  { %v2056_v63 = vmul.f32 %v2054_v61, %v2051_v60 }
0x1582   :  { %v2058_v0 = vadd.f32 %v2057_v62, %v2056_v63 }
0x1584   :  { %2234 = vrot.lane.b32.xlu0 %v2058_v0, %s3211_s27 }
0x15ab   :  { %v2153_v4 = vpop.permute.xlu1 %2152 }
0x15ac   :  { %v2155_v7 = vmul.f32 %v2153_v4, %v2150_v3 }
0x15ae   :  { %v2157_v8 = vadd.f32 %v2156_v5, %v2155_v7 }
0x15b0   :  { %2159 = vrot.lane.b32.xlu1 %v2157_v8, %s3211_s27 }
0x15f6   :  { %v2235_v10 = vpop.permute.xlu0 %2234 }
0x15f7   :  { %2861 = vmatmul.mubr.msk.f32.vlgmr.msra.gmra.mrb[22].mxu1 %vm99_vm1, %v2235_v10 }
0x1622   :  { %v2160_v12 = vpop.permute.xlu1 %2159 }
0x1623   :  { %2850 = vmatmul.mubr.msk.f32.vlgmr.msra.gmra.mrb[22].mxu0 %vm99_vm1, %v2160_v12 }
0x1624   :  { %2871 = vmatprep.mubr.msk.f32.mxu0 %vm3207_vm0, %v3208_v2 }
0x16ca   :  { %v2304_v13 = vpop.f32.mrb[22].mxu1 }
0x16cb   :  { %v2315_v14 = vadd.f32 %v2304_v13, %v3404_v48  ;;  %v2862_v15 = vpop.f32.mrb[23].mxu1 }
0x16cd   :  { %2317 = vrot.lane.b32.xlu0 %v2315_v14, %s3209_s20 }
0x16f6   :  { %v2229_v16 = vpop.f32.mrb[22].mxu0 }
0x16f7   :  { %v2851_v17 = vpop.f32.mrb[23].mxu0  ;;  %v2230_v18 = vadd.f32 %v3425_v51, %v2229_v16  ;;  %v2336_v51 = vld [vmem:[%s3713_s9 + $0x8] sm:$0xff] }
0x16f8   :  { %v3019_v29 = vpack.c.bf16 %v2336_v51, %v2335_v26 }
0x16f9   :  { %v2308_v19 = vadd.f32 %v2304_v13, %v2230_v18 }
0x16fa   :  { %3020 = vmatpush3.bf16.msra.mxu0 %v3019_v29 }
0x16fb   :  { %v2471_v20 = vmul.f32 -1.442695, %v2308_v19  ;;  %3021 = vmatprep.subr.bf16.mxu0 %v3206_v1 }
0x16fd   :  { %3125 = vpow2.f32 %v2471_v20 }
0x16fe   :  { %3023 = vmatpush3.bf16.msra.mxu0 %v3022_v31 }
0x1707   :  { %v3126_v21 = vpop.eup %3125 }
0x1708   :  { %v2312_v22 = vadd.f32 1.0, %v3126_v21 }
0x170a   :  { %3127 = vrcp.f32 %v2312_v22 }
0x1714   :  { %v3128_v23 = vpop.eup %3127 }
0x1715   :  { %v2327_v35 = vsub.f32 1.0, %v3128_v23  ;;  %v2333_v9 = vmul.f32 %v3128_v23, %v2058_v0 }
0x173f   :  { %v2318_v24 = vpop.permute.xlu0 %2317 }
0x1740   :  { %v2320_v25 = vmul.f32 %v3128_v23, %v2318_v24 }
0x1742   :  { %2322 = vrot.lane.b32.xlu1 %v2320_v25, %s3209_s20 }
0x17b4   :  { %v2323_v2 = vpop.permute.xlu1 %2322 }
0x17b5   :  { %v2325_v48 = vadd.f32 %v2323_v2, %v2230_v18 }
0x17b7   :  { %3129 = vtanh.f32 %v2325_v48 }
0x17c1   :  { %v3130_v6 = vpop.eup %3129 }
0x17c2   :  { %2329 = vrot.lane.b32.xlu0 %v3130_v6, %s3211_s27 }
0x1834   :  { %v2330_v36 = vpop.permute.xlu0 %2329 }
0x1835   :  { %v2332_v32 = vmul.f32 %v2330_v36, %v2327_v35 }
0x1837   :  { %v2334_v33 = vadd.f32 %v2333_v9, %v2332_v32 }
0x1839   :  { %2347 = vrot.lane.b32.xlu1 %v2334_v33, %s3211_s27 }
0x18ab   :  { %v2348_v37 = vpop.permute.xlu1 %2347 }
0x18ac   :  { %2872 = vmatmul.mubr.msk.f32.vlgmr.msra.gmra.mrb[24].mxu0 %vm99_vm1, %v2348_v37 }
0x197f   :  { %v2417_v28 = vpop.f32.mrb[24].mxu0 }
0x1980   :  { %v2418_v39 = vadd.f32 %v2472_v38, %v2417_v28  ;;  %v2873_v40 = vpop.f32.mrb[25].mxu0 }
0x1982   :  { %2422 = vst.msk [vmem:[%s3715_s11] sm:$0xff] %vm2421_vm2, %v2418_v39 }
0x1983   :  { %2427 = vsyncpa [#allocation4], 1 }
0x1984   :  { %2428 = vsyncpa [#allocation6], 1 }

</bundles_post_ra>
